<compile_context>
chip_gen: v7x
topology: tpu7x:2x2x1
jax: 0.10.0
libtpu: 0.0.40
codegen_flags: <defaults>
</compile_context>

<pallas_src>
import functools

import jax
import jax.numpy as jnp
from jax.experimental import pallas as pl
from jax.experimental.pallas import tpu as pltpu

# MXU matmul operand dtype for the dense stack / final linear (accum in f32).
MXU_DTYPE = jnp.bfloat16


def dense_cnn_fused_kernel(
    lengths_ref,              # SMEM (B,)            int32
    y_ref,                    # VMEM (B*T, F)        f32   channels-last input
    trel_ref,                 # VMEM (B*OS, B*T)     int32 static t-o map (big off-block)
    gbl_ref,                  # VMEM (3, max(F,N))   f32   gamma | beta | blin (padded)
    bw_ref,                   # VMEM (5, 5*OF)       f32   conv biases, block-widened
    w1_ref,                   # VMEM (F,    5*OF)    bf16  conv1 weight, widened (block 0)
    w2_ref,                   # VMEM (OF,   5*OF)    bf16  conv2 weight, widened (block 1)
    w3_ref,                   # VMEM (2*OF, 5*OF)    bf16  conv3 weight, widened (block 2)
    w4_ref,                   # VMEM (3*OF, 5*OF)    bf16  conv4 weight, widened (block 3)
    w5_ref,                   # VMEM (4*OF, 5*OF)    bf16  conv5 weight, widened (block 4)
    u_ref,                    # VMEM (5*OF, N*OS)    bf16  rearranged final-linear weight
    dmask_ref,                # VMEM (B*OS, N*OS)    f32   static diag mask o'(col)==o(row)
    smat_ref,                 # VMEM (N*OS, N)       f32   static class-block selector
    amat_ref,                 # VMEM (B,    B*OS)    f32   static batch-block selector
    out_ref,                  # VMEM (B, N)          f32
    *, B, OS, N):
    f32 = jnp.float32
    R = B * OS
    F_in = y_ref.shape[1]

    # ---- grouped "averaging" conv2d == ONE matmul with a band matrix --------
    # band[r, c] = 1/fs_b(r)  iff  0 <= trel[r, c] < fs_b(r);  the static
    # (batch-block / t>=o) structure is baked into trel, fs_b comes from SMEM.
    r1 = jax.lax.broadcasted_iota(jnp.int32, (R, 1), 0)
    fs_i = jnp.ones((R, 1), jnp.int32)
    for b in range(B):                                    # B static -> unrolled
        fs_b = jnp.maximum(lengths_ref[b] - OS + 1, 1)    # clamp: fs >= 1
        fs_i = jnp.where((r1 >= b * OS) & (r1 < (b + 1) * OS), fs_b, fs_i)
    inv_fs = 1.0 / fs_i.astype(f32)                       # (R, 1), tiny
    band = jnp.where(trel_ref[...] < fs_i, inv_fs, 0.0)   # (R, B*T) f32
    ya = jnp.dot(band, y_ref[...], preferred_element_type=f32)     # (R, F)

    # ---- BatchNorm1d (training-mode batch stats), two-pass (safe) variance --
    gamma = gbl_ref[pl.ds(0, 1), :][:, :F_in]
    beta = gbl_ref[pl.ds(1, 1), :][:, :F_in]
    inv_n = 1.0 / float(R)
    mean = jnp.sum(ya, axis=0, keepdims=True) * inv_n
    cen = ya - mean
    var = jnp.sum(cen * cen, axis=0, keepdims=True) * inv_n        # >= 0
    xn = cen * jax.lax.rsqrt(var + 1e-5) * gamma + beta

    # ---- dense k=1 conv stack: ONE dot per stage onto a (R, 5*OF) slab ------
    # Stage i reads the first i*OF slab columns and its block-widened weight
    # writes only its own OF-wide block; blocks are disjoint so `slab += ci`
    # is exact (zero blocks stay exactly zero through bias=0 and ReLU).
    slab = jnp.maximum(
        jnp.dot(xn.astype(MXU_DTYPE), w1_ref[...], preferred_element_type=f32)
        + bw_ref[pl.ds(0, 1), :], 0.0).astype(MXU_DTYPE)            # conv1
    for i, w_ref in enumerate((w2_ref, w3_ref, w4_ref, w5_ref), start=1):
        kin = w_ref.shape[0]                                        # i * OF
        ci = jnp.maximum(
            jnp.dot(slab[:, :kin], w_ref[...], preferred_element_type=f32)
            + bw_ref[pl.ds(i, 1), :], 0.0).astype(MXU_DTYPE)
        slab = slab + ci
    # ReLU(torch.cat(...)) and MaxPool1d(1,1) are identities; Dropout and
    # finalconv are unused in forward() -> dropped.

    # ---- fused channel-major flatten + Linear + Softmax ---------------------
    # U[c, n*OS+o'] = wlin[n, c*OS+o']  =>  P[r, n*OS+o'] = sum_c slab[r,c]*U.
    # Keep o' == o(r) (dmask), sum each class block (smat), sum rows per batch
    # (amat): exact channel-major flatten + Linear without any reshapes.
    P = jnp.dot(slab, u_ref[...], preferred_element_type=f32)       # (R, N*OS)
    Q = jnp.dot(P * dmask_ref[...], smat_ref[...],
                preferred_element_type=f32)                         # (R, N)
    blin = gbl_ref[pl.ds(2, 1), :][:, :N]
    logits = jnp.dot(amat_ref[...], Q, preferred_element_type=f32) + blin

    m = jnp.max(logits, axis=1, keepdims=True)
    e = jnp.exp(logits - m)
    out_ref[...] = e * pl.reciprocal(jnp.sum(e, axis=1, keepdims=True),
                                     approx=True)


def dense_cnn_forward(y, lengths, params, *, output_size):
    """Single fused Pallas call equivalent to dense_CNNModel.forward."""
    B, T, F = y.shape
    OF = params['w1'].shape[0]
    N = params['wlin'].shape[0]
    OS = output_size
    C = 5 * OF
    R = B * OS
    K = N * OS
    assert params['wlin'].shape[1] == C * OS, "Linear in_features mismatch"
    # NOTE: like the PyTorch module, this assumes max(lengths) == T so the
    # grouped-conv output length equals `output_size`; fs is clamped to >= 1.

    f32 = jnp.float32
    y2d = y.astype(f32).reshape(B * T, F)                # channels-last slab

    # Block-widened per-stage conv weights (stage i -> output columns block i).
    def widen_w(w, i):
        wt = jnp.asarray(w, f32).T                       # (Cin_i, OF)
        wide = jnp.zeros((wt.shape[0], C), f32)
        wide = wide.at[:, i * OF:(i + 1) * OF].set(wt)
        return wide.astype(MXU_DTYPE)

    bwide = jnp.zeros((5, C), f32)
    for i, name in enumerate(('b1', 'b2', 'b3', 'b4', 'b5')):
        bwide = bwide.at[i, i * OF:(i + 1) * OF].set(jnp.asarray(params[name], f32))

    # Final-linear weight rearranged: U[c, n*OS + o] = wlin[n, c*OS + o].
    U = (jnp.asarray(params['wlin'], f32).reshape(N, C, OS)
         .transpose(1, 0, 2).reshape(C, K).astype(MXU_DTYPE))

    GW = max(F, N)
    gbl = jnp.zeros((3, GW), f32)
    gbl = gbl.at[0, :F].set(jnp.asarray(params['gamma'], f32))
    gbl = gbl.at[1, :F].set(jnp.asarray(params['beta'], f32))
    gbl = gbl.at[2, :N].set(jnp.asarray(params['blin'], f32))

    # Static (length-independent) index tensors, constant-folded by XLA and
    # DMA'd with the weights -> no iota/compare chains on the kernel hot path.
    ridx = jnp.arange(R)
    kidx = jnp.arange(K)
    cidx = jnp.arange(B * T)
    ro, rb = ridx % OS, ridx // OS
    ct, cb = cidx % T, cidx // T
    onblk = (rb[:, None] == cb[None, :]) & (ct[None, :] >= ro[:, None])
    trel = jnp.where(onblk, ct[None, :] - ro[:, None], 10 ** 6).astype(jnp.int32)
    dmask = (ro[:, None] == (kidx % OS)[None, :]).astype(f32)             # (R, K)
    smat = ((kidx // OS)[:, None] == jnp.arange(N)[None, :]).astype(f32)  # (K, N)
    amat = (jnp.arange(B)[:, None] == rb[None, :]).astype(f32)            # (B, R)

    args = (
        lengths.astype(jnp.int32),
        y2d, trel, gbl, bwide,
        widen_w(params['w1'], 0), widen_w(params['w2'], 1),
        widen_w(params['w3'], 2), widen_w(params['w4'], 3),
        widen_w(params['w5'], 4),
        U, dmask, smat, amat,
    )

    smem = pl.BlockSpec(memory_space=pltpu.MemorySpace.SMEM)
    vmem = pl.BlockSpec(memory_space=pltpu.MemorySpace.VMEM)
    kernel = functools.partial(dense_cnn_fused_kernel, B=B, OS=OS, N=N)

    # TODO(synk): for production batch sizes on v7x, add a batch grid with
    # dimension_semantics=("parallel",) and precomputed BN statistics so both
    # TensorCores are used; at B=2 a single no-grid call is optimal.
    return pl.pallas_call(
        kernel,
        out_shape=jax.ShapeDtypeStruct((B, N), f32),
        in_specs=[smem] + [vmem] * (len(args) - 1),
        out_specs=vmem,
    )(*args)


def dense_cnn_reference(y, lengths, params, *, output_size):
    """Pure-JAX (f32) mirror of the PyTorch forward, used as a numeric check."""
    B, T, F = y.shape
    OS = output_size
    f32 = jnp.float32
    fs = (lengths - OS + 1)[:, None, None]                        # (B,1,1) int
    o = jnp.arange(OS)[None, :, None]
    t = jnp.arange(T)[None, None, :]
    filt = jnp.where((t >= o) & (t < o + fs), 1.0, 0.0) / fs.astype(f32)
    ya = jnp.einsum('bot,btf->bof', filt, y.astype(f32))          # (B,OS,F)
    mean = jnp.mean(ya, axis=(0, 1), keepdims=True)
    var = jnp.mean((ya - mean) ** 2, axis=(0, 1), keepdims=True)
    xn = ((ya - mean) / jnp.sqrt(var + 1e-5)
          * params['gamma'].reshape(1, 1, F) + params['beta'].reshape(1, 1, F))

    relu = lambda v: jnp.maximum(v, 0.0)
    conv = lambda x, w, b: jnp.einsum('bof,gf->bog', x, w.astype(f32)) + b.astype(f32)
    c1 = relu(conv(xn, params['w1'], params['b1']))
    c2 = relu(conv(c1, params['w2'], params['b2']))
    c3 = relu(conv(jnp.concatenate([c1, c2], -1), params['w3'], params['b3']))
    c4 = relu(conv(jnp.concatenate([c1, c2, c3], -1), params['w4'], params['b4']))
    c5 = relu(conv(jnp.concatenate([c1, c2, c3, c4], -1), params['w5'], params['b5']))
    d5 = jnp.concatenate([c1, c2, c3, c4, c5], -1)                # (B, OS, C)
    flat = jnp.transpose(d5, (0, 2, 1)).reshape(B, -1)            # channel-major
    logits = flat @ params['wlin'].astype(f32).T + params['blin'].astype(f32)
    return jax.nn.softmax(logits, axis=1)


if __name__ == "__main__":
    B = 2
    input_size = 8       # F: feature channels entering BatchNorm1d / conv1
    out_features = 42    # OF
    output_size = 20     # OS ; 5 * 42 * 20 == 4200 == Linear in_features
    num_classes = 5
    T = 30               # padded sequence length (== max(lengths))

    key = jax.random.PRNGKey(0)
    ks = jax.random.split(key, 16)

    def init_w(k, shape, fan_in):
        return jax.random.normal(k, shape, jnp.float32) / jnp.sqrt(float(fan_in))

    params = dict(
        gamma=jnp.ones((input_size,), jnp.float32),
        beta=jnp.zeros((input_size,), jnp.float32),
        w1=init_w(ks[0], (out_features, input_size), input_size),
        b1=init_w(ks[1], (out_features,), input_size),
        w2=init_w(ks[2], (out_features, out_features), out_features),
        b2=init_w(ks[3], (out_features,), out_features),
        w3=init_w(ks[4], (out_features, 2 * out_features), 2 * out_features),
        b3=init_w(ks[5], (out_features,), 2 * out_features),
        w4=init_w(ks[6], (out_features, 3 * out_features), 3 * out_features),
        b4=init_w(ks[7], (out_features,), 3 * out_features),
        w5=init_w(ks[8], (out_features, 4 * out_features), 4 * out_features),
        b5=init_w(ks[9], (out_features,), 4 * out_features),
        wlin=init_w(ks[10], (num_classes, 5 * out_features * output_size),
                    5 * out_features * output_size),
        blin=init_w(ks[11], (num_classes,), 5 * out_features * output_size),
    )

    y = jax.random.normal(ks[12], (B, T, input_size), jnp.float32)
    lengths = jnp.array([30, 26], dtype=jnp.int32)
    assert int(lengths.max()) == T   # so conv output time dim == output_size

    out = dense_cnn_forward(y, lengths, params, output_size=output_size)
    out = jax.block_until_ready(out)
    ref = jax.block_until_ready(
        dense_cnn_reference(y, lengths, params, output_size=output_size))

    assert out.shape == (B, num_classes)
    assert bool(jnp.all(jnp.isfinite(out)))
    # bf16 MXU operands (f32 accumulation) -> loose but bug-catching tolerance.
    assert bool(jnp.allclose(out, ref, atol=5e-2, rtol=0.0))
    print("KERNEL_OK")
</pallas_src>

<mosaic_0001>
module attributes {stable_mosaic.version = 11 : i64} {
  func.func @dense_cnn_fused_kernel(%arg0: memref<2xi32, #tpu.memory_space<smem>>, %arg1: memref<60x8xf32, #tpu.memory_space<vmem>>, %arg2: memref<40x60xi32, #tpu.memory_space<vmem>>, %arg3: memref<3x8xf32, #tpu.memory_space<vmem>>, %arg4: memref<5x210xf32, #tpu.memory_space<vmem>>, %arg5: memref<8x210xbf16, #tpu.memory_space<vmem>>, %arg6: memref<42x210xbf16, #tpu.memory_space<vmem>>, %arg7: memref<84x210xbf16, #tpu.memory_space<vmem>>, %arg8: memref<126x210xbf16, #tpu.memory_space<vmem>>, %arg9: memref<168x210xbf16, #tpu.memory_space<vmem>>, %arg10: memref<210x100xbf16, #tpu.memory_space<vmem>>, %arg11: memref<40x100xf32, #tpu.memory_space<vmem>>, %arg12: memref<100x5xf32, #tpu.memory_space<vmem>>, %arg13: memref<2x40xf32, #tpu.memory_space<vmem>>, %arg14: memref<2x5xf32, #tpu.memory_space<vmem>>) attributes {dimension_semantics = [], scalar_prefetch = 0 : i64, scratch_operands = 0 : i64, tpu.core_type = #tpu.core_type<tc>} {
    %0 = tpu.iota {dimensions = array<i32: 0>} : vector<40x1xi32>
    %c1_i32 = arith.constant 1 : i32
    %1 = vector.broadcast %c1_i32 : i32 to vector<40x1xi32>
    %c0 = arith.constant 0 : index
    %2 = memref.load %arg0[%c0] : memref<2xi32, #tpu.memory_space<smem>>
    %c20_i32 = arith.constant 20 : i32
    %3 = arith.subi %2, %c20_i32 : i32
    %c1_i32_0 = arith.constant 1 : i32
    %4 = arith.addi %3, %c1_i32_0 : i32
    %c1_i32_1 = arith.constant 1 : i32
    %5 = arith.maxsi %4, %c1_i32_1 : i32
    %c0_i32 = arith.constant 0 : i32
    %6 = vector.broadcast %c0_i32 : i32 to vector<40x1xi32>
    %7 = arith.cmpi sge, %0, %6 : vector<40x1xi32>
    %c20_i32_2 = arith.constant 20 : i32
    %8 = vector.broadcast %c20_i32_2 : i32 to vector<40x1xi32>
    %9 = arith.cmpi slt, %0, %8 : vector<40x1xi32>
    %10 = arith.andi %7, %9 : vector<40x1xi1>
    %11 = vector.broadcast %5 : i32 to vector<40x1xi32>
    %12 = arith.select %10, %11, %1 : vector<40x1xi1>, vector<40x1xi32>
    %c1 = arith.constant 1 : index
    %13 = memref.load %arg0[%c1] : memref<2xi32, #tpu.memory_space<smem>>
    %c20_i32_3 = arith.constant 20 : i32
    %14 = arith.subi %13, %c20_i32_3 : i32
    %c1_i32_4 = arith.constant 1 : i32
    %15 = arith.addi %14, %c1_i32_4 : i32
    %c1_i32_5 = arith.constant 1 : i32
    %16 = arith.maxsi %15, %c1_i32_5 : i32
    %c20_i32_6 = arith.constant 20 : i32
    %17 = vector.broadcast %c20_i32_6 : i32 to vector<40x1xi32>
    %18 = arith.cmpi sge, %0, %17 : vector<40x1xi32>
    %c40_i32 = arith.constant 40 : i32
    %19 = vector.broadcast %c40_i32 : i32 to vector<40x1xi32>
    %20 = arith.cmpi slt, %0, %19 : vector<40x1xi32>
    %21 = arith.andi %18, %20 : vector<40x1xi1>
    %22 = vector.broadcast %16 : i32 to vector<40x1xi32>
    %23 = arith.select %21, %22, %12 : vector<40x1xi1>, vector<40x1xi32>
    %24 = arith.sitofp %23 : vector<40x1xi32> to vector<40x1xf32>
    %cst = arith.constant 1.000000e+00 : f32
    %25 = vector.broadcast %cst : f32 to vector<40x1xf32>
    %26 = arith.divf %25, %24 : vector<40x1xf32>
    %c0_7 = arith.constant 0 : index
    %c0_8 = arith.constant 0 : index
    %27 = vector.load %arg2[%c0_7, %c0_8] : memref<40x60xi32, #tpu.memory_space<vmem>>, vector<40x60xi32>
    %28 = vector.broadcast %23 : vector<40x1xi32> to vector<40x60xi32>
    %29 = arith.cmpi slt, %27, %28 : vector<40x60xi32>
    %cst_9 = arith.constant 0.000000e+00 : f32
    %30 = vector.shape_cast %26 : vector<40x1xf32> to vector<40x1xf32>
    %31 = vector.broadcast %30 : vector<40x1xf32> to vector<40x60xf32>
    %32 = vector.broadcast %cst_9 : f32 to vector<40x60xf32>
    %33 = arith.select %29, %31, %32 : vector<40x60xi1>, vector<40x60xf32>
    %c0_10 = arith.constant 0 : index
    %c0_11 = arith.constant 0 : index
    %34 = vector.load %arg1[%c0_10, %c0_11] : memref<60x8xf32, #tpu.memory_space<vmem>>, vector<60x8xf32>
    %cst_12 = arith.constant dense<0.000000e+00> : vector<40x8xf32>
    %35 = tpu.matmul %33, %34, %cst_12 {dimension_numbers = #tpu.dot_dimension_numbers<[1], [0], [0], [1], [0, 0, 1, 1], [], []>} : vector<40x60xf32>, vector<60x8xf32>, vector<40x8xf32> -> vector<40x8xf32>
    %c0_13 = arith.constant 0 : index
    %c0_14 = arith.constant 0 : index
    %36 = vector.load %arg3[%c0_13, %c0_14] : memref<3x8xf32, #tpu.memory_space<vmem>>, vector<1x8xf32>
    %c1_15 = arith.constant 1 : index
    %c0_16 = arith.constant 0 : index
    %37 = vector.load %arg3[%c1_15, %c0_16] : memref<3x8xf32, #tpu.memory_space<vmem>>, vector<1x8xf32>
    %cst_17 = arith.constant dense<0.000000e+00> : vector<8xf32>
    %38 = vector.multi_reduction <add>, %35, %cst_17 [0] : vector<40x8xf32> to vector<8xf32>
    %39 = vector.shape_cast %38 : vector<8xf32> to vector<1x8xf32>
    %cst_18 = arith.constant 2.500000e-02 : f32
    %40 = vector.broadcast %cst_18 : f32 to vector<1x8xf32>
    %41 = arith.mulf %39, %40 : vector<1x8xf32>
    %42 = vector.broadcast %41 : vector<1x8xf32> to vector<40x8xf32>
    %43 = arith.subf %35, %42 : vector<40x8xf32>
    %44 = arith.mulf %43, %43 : vector<40x8xf32>
    %cst_19 = arith.constant dense<0.000000e+00> : vector<8xf32>
    %45 = vector.multi_reduction <add>, %44, %cst_19 [0] : vector<40x8xf32> to vector<8xf32>
    %46 = vector.shape_cast %45 : vector<8xf32> to vector<1x8xf32>
    %cst_20 = arith.constant 2.500000e-02 : f32
    %47 = vector.broadcast %cst_20 : f32 to vector<1x8xf32>
    %48 = arith.mulf %46, %47 : vector<1x8xf32>
    %cst_21 = arith.constant 9.99999974E-6 : f32
    %49 = vector.broadcast %cst_21 : f32 to vector<1x8xf32>
    %50 = arith.addf %48, %49 : vector<1x8xf32>
    %51 = math.rsqrt %50 : vector<1x8xf32>
    %52 = vector.broadcast %51 : vector<1x8xf32> to vector<40x8xf32>
    %53 = arith.mulf %43, %52 : vector<40x8xf32>
    %54 = vector.broadcast %36 : vector<1x8xf32> to vector<40x8xf32>
    %55 = arith.mulf %53, %54 : vector<40x8xf32>
    %56 = vector.broadcast %37 : vector<1x8xf32> to vector<40x8xf32>
    %57 = arith.addf %55, %56 : vector<40x8xf32>
    %58 = arith.truncf %57 : vector<40x8xf32> to vector<40x8xbf16>
    %c0_22 = arith.constant 0 : index
    %c0_23 = arith.constant 0 : index
    %59 = vector.load %arg5[%c0_22, %c0_23] : memref<8x210xbf16, #tpu.memory_space<vmem>>, vector<8x210xbf16>
    %cst_24 = arith.constant dense<0.000000e+00> : vector<40x210xf32>
    %60 = tpu.matmul %58, %59, %cst_24 {dimension_numbers = #tpu.dot_dimension_numbers<[1], [0], [0], [1], [0, 0, 1, 1], [], []>} : vector<40x8xbf16>, vector<8x210xbf16>, vector<40x210xf32> -> vector<40x210xf32>
    %c0_25 = arith.constant 0 : index
    %c0_26 = arith.constant 0 : index
    %61 = vector.load %arg4[%c0_25, %c0_26] : memref<5x210xf32, #tpu.memory_space<vmem>>, vector<1x210xf32>
    %62 = vector.broadcast %61 : vector<1x210xf32> to vector<40x210xf32>
    %63 = arith.addf %60, %62 : vector<40x210xf32>
    %cst_27 = arith.constant 0.000000e+00 : f32
    %64 = vector.broadcast %cst_27 : f32 to vector<40x210xf32>
    %65 = arith.maximumf %63, %64 : vector<40x210xf32>
    %66 = arith.truncf %65 : vector<40x210xf32> to vector<40x210xbf16>
    %67 = vector.extract_strided_slice %66 {offsets = [0, 0], sizes = [40, 42], strides = [1, 1]} : vector<40x210xbf16> to vector<40x42xbf16>
    %c0_28 = arith.constant 0 : index
    %c0_29 = arith.constant 0 : index
    %68 = vector.load %arg6[%c0_28, %c0_29] : memref<42x210xbf16, #tpu.memory_space<vmem>>, vector<42x210xbf16>
    %cst_30 = arith.constant dense<0.000000e+00> : vector<40x210xf32>
    %69 = tpu.matmul %67, %68, %cst_30 {dimension_numbers = #tpu.dot_dimension_numbers<[1], [0], [0], [1], [0, 0, 1, 1], [], []>} : vector<40x42xbf16>, vector<42x210xbf16>, vector<40x210xf32> -> vector<40x210xf32>
    %c1_31 = arith.constant 1 : index
    %c0_32 = arith.constant 0 : index
    %70 = vector.load %arg4[%c1_31, %c0_32] : memref<5x210xf32, #tpu.memory_space<vmem>>, vector<1x210xf32>
    %71 = vector.broadcast %70 : vector<1x210xf32> to vector<40x210xf32>
    %72 = arith.addf %69, %71 : vector<40x210xf32>
    %cst_33 = arith.constant 0.000000e+00 : f32
    %73 = vector.broadcast %cst_33 : f32 to vector<40x210xf32>
    %74 = arith.maximumf %72, %73 : vector<40x210xf32>
    %75 = arith.truncf %74 : vector<40x210xf32> to vector<40x210xbf16>
    %76 = arith.addf %66, %75 : vector<40x210xbf16>
    %77 = vector.extract_strided_slice %76 {offsets = [0, 0], sizes = [40, 84], strides = [1, 1]} : vector<40x210xbf16> to vector<40x84xbf16>
    %c0_34 = arith.constant 0 : index
    %c0_35 = arith.constant 0 : index
    %78 = vector.load %arg7[%c0_34, %c0_35] : memref<84x210xbf16, #tpu.memory_space<vmem>>, vector<84x210xbf16>
    %cst_36 = arith.constant dense<0.000000e+00> : vector<40x210xf32>
    %79 = tpu.matmul %77, %78, %cst_36 {dimension_numbers = #tpu.dot_dimension_numbers<[1], [0], [0], [1], [0, 0, 1, 1], [], []>} : vector<40x84xbf16>, vector<84x210xbf16>, vector<40x210xf32> -> vector<40x210xf32>
    %c2 = arith.constant 2 : index
    %c0_37 = arith.constant 0 : index
    %80 = vector.load %arg4[%c2, %c0_37] : memref<5x210xf32, #tpu.memory_space<vmem>>, vector<1x210xf32>
    %81 = vector.broadcast %80 : vector<1x210xf32> to vector<40x210xf32>
    %82 = arith.addf %79, %81 : vector<40x210xf32>
    %cst_38 = arith.constant 0.000000e+00 : f32
    %83 = vector.broadcast %cst_38 : f32 to vector<40x210xf32>
    %84 = arith.maximumf %82, %83 : vector<40x210xf32>
    %85 = arith.truncf %84 : vector<40x210xf32> to vector<40x210xbf16>
    %86 = arith.addf %76, %85 : vector<40x210xbf16>
    %87 = vector.extract_strided_slice %86 {offsets = [0, 0], sizes = [40, 126], strides = [1, 1]} : vector<40x210xbf16> to vector<40x126xbf16>
    %c0_39 = arith.constant 0 : index
    %c0_40 = arith.constant 0 : index
    %88 = vector.load %arg8[%c0_39, %c0_40] : memref<126x210xbf16, #tpu.memory_space<vmem>>, vector<126x210xbf16>
    %cst_41 = arith.constant dense<0.000000e+00> : vector<40x210xf32>
    %89 = tpu.matmul %87, %88, %cst_41 {dimension_numbers = #tpu.dot_dimension_numbers<[1], [0], [0], [1], [0, 0, 1, 1], [], []>} : vector<40x126xbf16>, vector<126x210xbf16>, vector<40x210xf32> -> vector<40x210xf32>
    %c3 = arith.constant 3 : index
    %c0_42 = arith.constant 0 : index
    %90 = vector.load %arg4[%c3, %c0_42] : memref<5x210xf32, #tpu.memory_space<vmem>>, vector<1x210xf32>
    %91 = vector.broadcast %90 : vector<1x210xf32> to vector<40x210xf32>
    %92 = arith.addf %89, %91 : vector<40x210xf32>
    %cst_43 = arith.constant 0.000000e+00 : f32
    %93 = vector.broadcast %cst_43 : f32 to vector<40x210xf32>
    %94 = arith.maximumf %92, %93 : vector<40x210xf32>
    %95 = arith.truncf %94 : vector<40x210xf32> to vector<40x210xbf16>
    %96 = arith.addf %86, %95 : vector<40x210xbf16>
    %97 = vector.extract_strided_slice %96 {offsets = [0, 0], sizes = [40, 168], strides = [1, 1]} : vector<40x210xbf16> to vector<40x168xbf16>
    %c0_44 = arith.constant 0 : index
    %c0_45 = arith.constant 0 : index
    %98 = vector.load %arg9[%c0_44, %c0_45] : memref<168x210xbf16, #tpu.memory_space<vmem>>, vector<168x210xbf16>
    %cst_46 = arith.constant dense<0.000000e+00> : vector<40x210xf32>
    %99 = tpu.matmul %97, %98, %cst_46 {dimension_numbers = #tpu.dot_dimension_numbers<[1], [0], [0], [1], [0, 0, 1, 1], [], []>} : vector<40x168xbf16>, vector<168x210xbf16>, vector<40x210xf32> -> vector<40x210xf32>
    %c4 = arith.constant 4 : index
    %c0_47 = arith.constant 0 : index
    %100 = vector.load %arg4[%c4, %c0_47] : memref<5x210xf32, #tpu.memory_space<vmem>>, vector<1x210xf32>
    %101 = vector.broadcast %100 : vector<1x210xf32> to vector<40x210xf32>
    %102 = arith.addf %99, %101 : vector<40x210xf32>
    %cst_48 = arith.constant 0.000000e+00 : f32
    %103 = vector.broadcast %cst_48 : f32 to vector<40x210xf32>
    %104 = arith.maximumf %102, %103 : vector<40x210xf32>
    %105 = arith.truncf %104 : vector<40x210xf32> to vector<40x210xbf16>
    %106 = arith.addf %96, %105 : vector<40x210xbf16>
    %c0_49 = arith.constant 0 : index
    %c0_50 = arith.constant 0 : index
    %107 = vector.load %arg10[%c0_49, %c0_50] : memref<210x100xbf16, #tpu.memory_space<vmem>>, vector<210x100xbf16>
    %cst_51 = arith.constant dense<0.000000e+00> : vector<40x100xf32>
    %108 = tpu.matmul %106, %107, %cst_51 {dimension_numbers = #tpu.dot_dimension_numbers<[1], [0], [0], [1], [0, 0, 1, 1], [], []>} : vector<40x210xbf16>, vector<210x100xbf16>, vector<40x100xf32> -> vector<40x100xf32>
    %c0_52 = arith.constant 0 : index
    %c0_53 = arith.constant 0 : index
    %109 = vector.load %arg11[%c0_52, %c0_53] : memref<40x100xf32, #tpu.memory_space<vmem>>, vector<40x100xf32>
    %110 = arith.mulf %108, %109 : vector<40x100xf32>
    %c0_54 = arith.constant 0 : index
    %c0_55 = arith.constant 0 : index
    %111 = vector.load %arg12[%c0_54, %c0_55] : memref<100x5xf32, #tpu.memory_space<vmem>>, vector<100x5xf32>
    %cst_56 = arith.constant dense<0.000000e+00> : vector<40x5xf32>
    %112 = tpu.matmul %110, %111, %cst_56 {dimension_numbers = #tpu.dot_dimension_numbers<[1], [0], [0], [1], [0, 0, 1, 1], [], []>} : vector<40x100xf32>, vector<100x5xf32>, vector<40x5xf32> -> vector<40x5xf32>
    %c2_57 = arith.constant 2 : index
    %c0_58 = arith.constant 0 : index
    %113 = vector.load %arg3[%c2_57, %c0_58] : memref<3x8xf32, #tpu.memory_space<vmem>>, vector<1x8xf32>
    %114 = vector.extract_strided_slice %113 {offsets = [0, 0], sizes = [1, 5], strides = [1, 1]} : vector<1x8xf32> to vector<1x5xf32>
    %c0_59 = arith.constant 0 : index
    %c0_60 = arith.constant 0 : index
    %115 = vector.load %arg13[%c0_59, %c0_60] : memref<2x40xf32, #tpu.memory_space<vmem>>, vector<2x40xf32>
    %cst_61 = arith.constant dense<0.000000e+00> : vector<2x5xf32>
    %116 = tpu.matmul %115, %112, %cst_61 {dimension_numbers = #tpu.dot_dimension_numbers<[1], [0], [0], [1], [0, 0, 1, 1], [], []>} : vector<2x40xf32>, vector<40x5xf32>, vector<2x5xf32> -> vector<2x5xf32>
    %117 = vector.broadcast %114 : vector<1x5xf32> to vector<2x5xf32>
    %118 = arith.addf %116, %117 : vector<2x5xf32>
    %cst_62 = arith.constant dense<0xFF800000> : vector<2xf32>
    %119 = vector.multi_reduction <maximumf>, %118, %cst_62 [1] : vector<2x5xf32> to vector<2xf32>
    %120 = vector.shape_cast %119 : vector<2xf32> to vector<2x1xf32>
    %121 = vector.broadcast %120 : vector<2x1xf32> to vector<2x5xf32>
    %122 = arith.subf %118, %121 : vector<2x5xf32>
    %123 = math.exp %122 : vector<2x5xf32>
    %cst_63 = arith.constant dense<0.000000e+00> : vector<2xf32>
    %124 = vector.multi_reduction <add>, %123, %cst_63 [1] : vector<2x5xf32> to vector<2xf32>
    %125 = vector.shape_cast %124 : vector<2xf32> to vector<2x1xf32>
    %126 = tpu.reciprocal %125 {approx = true} : vector<2x1xf32> -> vector<2x1xf32>
    %127 = vector.broadcast %126 : vector<2x1xf32> to vector<2x5xf32>
    %128 = arith.mulf %123, %127 : vector<2x5xf32>
    %c0_64 = arith.constant 0 : index
    %c0_65 = arith.constant 0 : index
    %129 = vector.load %arg14[%c0_64, %c0_65] : memref<2x5xf32, #tpu.memory_space<vmem>>, vector<2x5xf32>
    tpu.vector_store %arg14[%c0_64, %c0_65], %128 {strides = array<i32>} : memref<2x5xf32, #tpu.memory_space<vmem>>, vector<2x5xf32>,
    return
  }
}

</mosaic_0001>

<bundles_post_ra>
// kernel: tpu_custom_call.1
= control target key start
LH: loop header
LB: loop body
LE: loop exit
PB: predicated region body
PF: predicated region fallthrough
CT: control target
= control target key end

     0   :  { %19 = vsyncpa [#allocation4], 0  ;;  %s2732_s0 = inlined_call_operand.vmem [shape: s32[2], index: 0, kind: input, shape index: {}]   ;;  %s2733_s1 = inlined_call_operand.vmem [shape: f32[60,8], index: 1, kind: input, shape index: {}]   ;;  %s2734_s2 = inlined_call_operand.vmem [shape: s32[40,60], index: 2, kind: input, shape index: {}]   ;;  %s2735_s3 = inlined_call_operand.vmem [shape: f32[3,8], index: 3, kind: input, shape index: {}]   ;;  %s2736_s4 = inlined_call_operand.vmem [shape: f32[5,210], index: 4, kind: input, shape index: {}]   ;;  %s2737_s5 = inlined_call_operand.vmem [shape: bf16[8,210], index: 5, kind: input, shape index: {}]   ;;  %s2738_s6 = inlined_call_operand.vmem [shape: bf16[42,210], index: 6, kind: input, shape index: {}]   ;;  %s2739_s7 = inlined_call_operand.vmem [shape: bf16[84,210], index: 7, kind: input, shape index: {}]   ;;  %s2740_s8 = inlined_call_operand.vmem [shape: bf16[126,210], index: 8, kind: input, shape index: {}]   ;;  %s2741_s9 = inlined_call_operand.vmem [shape: bf16[168,210], index: 9, kind: input, shape index: {}]   ;;  %s2742_s10 = inlined_call_operand.vmem [shape: bf16[210,100], index: 10, kind: input, shape index: {}]   ;;  %s2743_s11 = inlined_call_operand.vmem [shape: f32[40,100], index: 11, kind: input, shape index: {}]   ;;  %s2744_s12 = inlined_call_operand.vmem [shape: f32[100,5], index: 12, kind: input, shape index: {}]   ;;  %s2745_s13 = inlined_call_operand.vmem [shape: f32[2,40], index: 13, kind: input, shape index: {}]   ;;  %s2746_s14 = inlined_call_operand.hbm [shape: f32[2,5], index: 14, kind: output, shape index: {}]  }
   0x1   :  { %20 = vsyncpa [#allocation3], 0  ;;  %s27_s15 = sshll.u32 %s2732_s0, 4  ;;  %s28_s15 = int_to_ptr.vmem [resolvable:$true] %s27_s15 }
   0x2   :  { %s2029_s16 = scalar_lea.vmem %s28_s15, 16  ;;  %p2034_p1 = scmp.lt.s32.totalorder %s28_s15, %s28_s15 }
   0x3   :  { %p2030_p0 = scmp.ne.s32.totalorder %s28_s15, %s2029_s16  ;;  %p2035_p2 = scmp.lt.s32.totalorder %s2029_s16, %s2029_s16 }
   0x5   :  { %p2036_p3 = por %p2035_p2, %p2034_p1 }
   0x7   :  { %p2037_p4 = pnand %p2036_p3, %p2030_p0 }
   0x9   :  { %2040 = shalt.err (!%p2037_p4)
}
   0xa   :  { %s2067_s17 = smov [#allocation2]  }
   0xb   :  { %30 = dma.vmem_to_smem %s28_s15, 16, %s2067_s17, [#allocation4]  }
   0xc   :  { %2063 = dma.done.wait [#allocation4], 16  }
   0xd   :  { %2064 = vsyncadd [#allocation4], 4294967280 }
   0xe   :  { %60 = sfence }
   0xf   :  { %v148_v0 = vld [vmem:[%s2733_s1] sm:$0xff]  ;;  %v149_v1 = vld [vmem:[%s2733_s1 + $0x8] sm:$0xff]  ;;  %v150_v2 = vld [vmem:[%s2733_s1 + $0x10] sm:$0xff]  ;;  %vm172_vm0 = vcmask 1043456   ;;  %v62_v3 = vlaneseq  ;;  %v2068_v4 = vmov 0.0|0.0   ;;  %vm2069_vm1 = vmmov 0  }
  0x10   :  { %1875 = vmatprep.subr.bf16.mxu0 %v2068_v4  ;;  %v1876_v5 = vpack.c.bf16 %v149_v1, %v148_v0  ;;  %v151_v6 = vld [vmem:[%s2733_s1 + $0x18] sm:$0xff]  ;;  %v2070_v7 = vmov 0.0   ;;  %s68_s25 = sld [smem:[#allocation2]]  ;;  %v152_v9 = vld [vmem:[%s2733_s1 + $0x20] sm:$0xff]  ;;  %s1637_s28 = sld [smem:[#allocation2 + $0x1]]  ;;  %v153_v11 = vld [vmem:[%s2733_s1 + $0x28] sm:$0xff] }
  0x11   :  { %1806 = vmatprep.mubr.msk.f32.mxu0 %vm2069_vm1, %v2070_v7  ;;  %v1879_v8 = vpack.c.bf16 %v151_v6, %v150_v2  ;;  %v2170_v10 = vshrl.u32 %v62_v3, 7  ;;  %vm2071_vm2 = vmmov 1   ;;  %v154_v13 = vld [vmem:[%s2733_s1 + $0x30] sm:$0xff]  ;;  %v155_v14 = vld [vmem:[%s2733_s1 + $0x38] sm:$0xf]  ;;  %v1882_v15 = vpack.c.bf16 %v153_v11, %v152_v9  ;;  %v133_v24 = vld [vmem:[%s2734_s2] sm:$0xff] }
  0x12   :  { %1877 = vmatpush3.bf16.msra.mxu0 %v1876_v5  ;;  %vm2177_vm3 = vmpackc.low %vm172_vm0, %vm2071_vm2  ;;  %v1885_v17 = vpack.c.bf16 %v155_v14, %v154_v13  ;;  %vm156_vm6 = vcmask 490496   ;;  %v134_v26 = vld [vmem:[%s2734_s2 + $0x8] sm:$0xff]  ;;  %v135_v29 = vld [vmem:[%s2734_s2 + $0x10] sm:$0xff]  ;;  %v2072_v42 = vmov 0   ;;  %vm268_vm12 = vcmask 64512  }
  0x13   :  { %1878 = vmatprep.subr.bf16.mxu0 %v2068_v4  ;;  %v65_v16 = vadd.s32 16, %v2170_v10  ;;  %v136_v32 = vld [vmem:[%s2734_s2 + $0x18] sm:$0xff]  ;;  %v137_v35 = vld [vmem:[%s2734_s2 + $0x20] sm:$0xff]  ;;  %404 = vmatprep.mubr.bf16.mxu1 %v2072_v42  ;;  %vm506_vm13 = vcmask 1044480   ;;  %vm496_vm14 = vcmask 343040   ;;  %vm685_vm15 = vcmask 1041408  }
  0x14   :  { %v339_v38 = vld [vmem:[%s2737_s5] sm:$0xff]  ;;  %vm675_vm2 = vcmask 687104  }
  0x15   :  { %vm79_vm4 = vcmp.lt.s32.totalorder %v65_v16, 20  ;;  %vm99_vm5 = vcmp.ge.s32.totalorder %v65_v16, 20  ;;  %v1647_v39 = vcombine.high %v339_v38, %v339_v38  ;;  %v1646_v40 = vcombine.low %v339_v38, %v339_v38  ;;  %v1923_v43 = vld [vmem:[%s2738_s6 + $0x4] ss:$8 sps:$4 sm:$0xff]  }
  0x16   :  { %1880 = vmatpush3.bf16.msra.mxu0 %v1879_v8  ;;  %s69_s19 = sadd.s32 4294967277, %s68_s25  ;;  %s94_s20 = sadd.s32 4294967277, %s1637_s28 }
  0x17   :  { %1881 = vmatprep.subr.bf16.mxu0 %v2068_v4  ;;  %p70_p5 = scmp.gt.s32.totalorder %s69_s19, 1  ;;  %p95_p6 = scmp.gt.s32.totalorder %s94_s20, 1  ;;  %1648 = vmatprep.subr.msk.bf16.mxu1 %vm172_vm0, %v1647_v39  ;;  %v367_v41 = vsel %vm172_vm0, %v1646_v40, 0 }
  0x18   :  { %373 = vmatpush1.bf16.msra.mxu1 %v367_v41 }
  0x19   :  { %s2750_s19 = smov (!%p70_p5, %s69_s19), 1  ;;  %s2752_s20 = smov (!%p95_p6, %s94_s20), 1  ;;  %513 = vmatprep.subr.bf16.mxu1 %v1923_v43  ;;  %v1645_v43 = vld [vmem:[%s2735_s3 + $0x1] ss:$0 sm:$0xff] }
  0x1a   :  { %1883 = vmatpush3.bf16.msra.mxu0 %v1882_v15  ;;  %v87_v18 = vstv %s2750_s19  ;;  %v112_v21 = vstv %s2752_s20 }
  0x1b   :  { %1884 = vmatprep.subr.bf16.mxu0 %v2068_v4  ;;  %v118_v19 = vcvt.s32.f32 %v87_v18  ;;  %v90_v20 = vsel %vm79_vm4, %v87_v18, 1  ;;  %v121_v25 = vcvt.s32.f32 %v112_v21  ;;  %vm138_vm7 = vcmp.lt.s32.totalorder %v133_v24, %v87_v18 }
  0x1c   :  { %v115_v22 = vsel %vm99_vm5, %v112_v21, %v90_v20  ;;  %vm139_vm8 = vcmp.lt.s32.totalorder %v134_v26, %v87_v18  ;;  %vm141_vm10 = vcmp.lt.s32.totalorder %v136_v32, %v112_v21  ;;  %vm142_vm11 = vcmp.lt.s32.totalorder %v137_v35, %v112_v21 }
  0x1d   :  { %2017 = vrcp.f32 %v118_v19  ;;  %v120_v23 = vcvt.s32.f32 %v115_v22  ;;  %vm140_vm9 = vcmp.lt.s32.totalorder %v135_v29, %v115_v22  ;;  %vm882_vm4 = vcmask 1031168  }
  0x1e   :  { %1887 = vmatpush3.bf16.msk.msra.mxu0 %vm2177_vm3, %v1885_v17  ;;  %vm892_vm3 = vcmask 1046528   ;;  %vm1121_vm5 = vcmask 326656  }
  0x1f   :  { %2019 = vrcp.f32 %v120_v23 }
  0x20   :  { %2021 = vrcp.f32 %v121_v25 }
  0x27   :  { %v2018_v27 = vpop.eup %2017 }
  0x28   :  { %v143_v28 = vsel %vm138_vm7, %v2018_v27, 0.0  ;;  %v144_v30 = vsel %vm139_vm8, %v2018_v27, 0.0  ;;  %vm1328_vm7 = vcmask 670720   ;;  %vm1421_vm8 = vcmask 818176  }
  0x29   :  { %1807 = vmatmul.mubr.msk.f32.vlgmr.msra.gmra.mrb[0].mxu0 %vm156_vm6, %v143_v28  ;;  %v2020_v31 = vpop.eup %2019 }
  0x2a   :  { %1809 = vmatprep.mubr.msk.f32.mxu0 %vm2069_vm1, %v2070_v7  ;;  %v145_v33 = vsel %vm140_vm9, %v2020_v31, 0.0  ;;  %v2022_v34 = vpop.eup %2021 }
  0x2b   :  { %v146_v36 = vsel %vm141_vm10, %v2022_v34, 0.0  ;;  %v147_v37 = vsel %vm142_vm11, %v2022_v34, 0.0 }
  0x2d   :  { %1810 = vmatmul.mubr.msk.f32.gmra.mrb[2].mxu0 %vm156_vm6, %v144_v30 }
  0x2e   :  { %1812 = vmatprep.mubr.msk.f32.mxu0 %vm2069_vm1, %v2070_v7 }
  0x31   :  { %1813 = vmatmul.mubr.msk.f32.gmra.mrb[4].mxu0 %vm156_vm6, %v145_v33 }
  0x32   :  { %1815 = vmatprep.mubr.msk.f32.mxu0 %vm2069_vm1, %v2070_v7 }
  0x35   :  { %1816 = vmatmul.mubr.msk.f32.gmra.mrb[6].mxu0 %vm156_vm6, %v146_v36 }
  0x36   :  { %1818 = vmatprep.mubr.msk.f32.mxu0 %vm2069_vm1, %v2070_v7 }
  0x39   :  { %1819 = vmatmul.mubr.msk.f32.gmra.mrb[8].mxu0 %vm156_vm6, %v147_v37  ;;  %v1644_v37 = vld [vmem:[%s2735_s3] ss:$0 sm:$0xff]  ;;  %vm1338_vm6 = vcmask 1040384  }
  0x3a   :  { %724 = vmatprep.mubr.bf16.mxu0 %v2072_v42 }
  0xfc   :  { %v242_v44 = vpop.f32.mrb[0].mxu0 }
  0xfd   :  { %v1808_v45 = vpop.f32.mrb[1].mxu0  ;;  %v269_v47 = vsel %vm268_vm12, %v242_v44, 0.0 }
 0x100   :  { %v247_v46 = vpop.f32.mrb[2].mxu0 }
 0x101   :  { %v270_v48 = vsel %vm268_vm12, %v247_v46, 0.0  ;;  %v1811_v49 = vpop.f32.mrb[3].mxu0 }
 0x102   :  { %v271_v50 = vadd.f32 %v270_v48, %v269_v47 }
 0x104   :  { %v252_v51 = vpop.f32.mrb[4].mxu0 }
 0x105   :  { %v272_v52 = vsel %vm268_vm12, %v252_v51, 0.0  ;;  %v1814_v53 = vpop.f32.mrb[5].mxu0 }
 0x106   :  { %v273_v54 = vadd.f32 %v272_v52, %v271_v50  ;;  %v1921_v53 = vld [vmem:[%s2738_s6] ss:$8 sps:$4 sm:$0xff]  }
 0x108   :  { %v257_v55 = vpop.f32.mrb[6].mxu0 }
 0x109   :  { %v274_v56 = vsel %vm268_vm12, %v257_v55, 0.0  ;;  %v1817_v57 = vpop.f32.mrb[7].mxu0 }
 0x10a   :  { %v275_v58 = vadd.f32 %v274_v56, %v273_v54 }
 0x10c   :  { %v262_v59 = vpop.f32.mrb[8].mxu0 }
 0x10d   :  { %v276_v60 = vsel %vm268_vm12, %v262_v59, 0.0  ;;  %v1820_v61 = vpop.f32.mrb[9].mxu0 }
 0x10e   :  { %v277_v62 = vadd.f32 %v276_v60, %v275_v58  ;;  %v1924_v60 = vld [vmem:[%s2738_s6 + $0x10] ss:$8 sps:$4 sm:$0xff]   ;;  %v1927_v61 = vld [vmem:[%s2738_s6 + $0x24] ss:$8 sps:$4 sm:$0x1f]  }
 0x110   :  { %v278_v63 = vrot.slane %v277_v62, 4 }
 0x112   :  { %v279_v0 = vadd.f32 %v278_v63, %v277_v62  ;;  %v1929_v62 = vld [vmem:[%s2738_s6 + $0x20] ss:$8 sps:$4 sm:$0x1f]  }
 0x113   :  { %v508_v63 = vsel %vm506_vm13, %v1929_v62, 0  ;;  %v1953_v62 = vld [vmem:[%s2740_s8 + $0x20] ss:$8 sps:$4 sm:$0xff]  }
 0x114   :  { %v280_v1 = vrot.slane %v279_v0, 2 }
 0x116   :  { %v281_v2 = vadd.f32 %v280_v1, %v279_v0  ;;  %v1930_v0 = vld [vmem:[%s2739_s7] ss:$8 sps:$4 sm:$0xff]   ;;  %v1932_v1 = vld [vmem:[%s2739_s7 + $0x4] ss:$8 sps:$4 sm:$0xff]  }
 0x117   :  { %692 = vmatprep.subr.bf16.mxu0 %v1932_v1  ;;  %v1961_v1 = vld [vmem:[%s2740_s8 + $0x44] ss:$8 sps:$4 sm:$0xff]  }
 0x118   :  { %v282_v3 = vrot.slane %v281_v2, 1  ;;  %693 = vmatpush1.bf16.msra.mxu0 %v1930_v0  ;;  %v1956_v0 = vld [vmem:[%s2740_s8 + $0x30] ss:$8 sps:$4 sm:$0xff]  }
 0x11a   :  { %v283_v5 = vadd.f32 %v282_v3, %v281_v2  ;;  %v1935_v2 = vld [vmem:[%s2739_s7 + $0x14] ss:$8 sps:$4 sm:$0xff]   ;;  %v1933_v3 = vld [vmem:[%s2739_s7 + $0x10] ss:$8 sps:$4 sm:$0xff]  }
 0x11b   :  { %694 = vmatprep.subr.bf16.mxu0 %v1935_v2  ;;  %v1959_v2 = vld [vmem:[%s2740_s8 + $0x40] ss:$8 sps:$4 sm:$0xff]  }
 0x11c   :  { %v284_v6 = vmul.f32 0.025, %v283_v5  ;;  %v1938_v5 = vld [vmem:[%s2739_s7 + $0x24] ss:$8 sps:$4 sm:$0xff]   ;;  %695 = vmatpush1.bf16.msra.mxu0 %v1933_v3  ;;  %v1964_v3 = vld [vmem:[%s2740_s8 + $0x54] ss:$8 sps:$4 sm:$0xff]  }
 0x11d   :  { %696 = vmatprep.subr.bf16.mxu0 %v1938_v5  ;;  %v1962_v5 = vld [vmem:[%s2740_s8 + $0x50] ss:$8 sps:$4 sm:$0xff]  }
 0x11e   :  { %v285_v8 = vsub.f32 %v242_v44, %v284_v6  ;;  %v286_v9 = vsub.f32 %v247_v46, %v284_v6  ;;  %v287_v11 = vsub.f32 %v252_v51, %v284_v6  ;;  %v288_v12 = vsub.f32 %v257_v55, %v284_v6 }
 0x11f   :  { %v289_v13 = vsub.f32 %v262_v59, %v284_v6  ;;  %v1926_v59 = vld [vmem:[%s2738_s6 + $0x14] ss:$8 sps:$4 sm:$0xff]   ;;  %v1936_v6 = vld [vmem:[%s2739_s7 + $0x20] ss:$8 sps:$4 sm:$0xff]  }
 0x120   :  { %v290_v14 = vmul.f32 %v285_v8, %v285_v8  ;;  %v291_v15 = vmul.f32 %v286_v9, %v286_v9  ;;  %v292_v16 = vmul.f32 %v287_v11, %v287_v11  ;;  %v293_v17 = vmul.f32 %v288_v12, %v288_v12  ;;  %697 = vmatpush1.bf16.msra.mxu0 %v1936_v6  ;;  %v1652_v6 = vld [vmem:[%s2736_s4 + $0x1] ss:$8 sm:$0x3] }
 0x121   :  { %v294_v21 = vmul.f32 %v289_v13, %v289_v13 }
 0x122   :  { %v295_v18 = vsel %vm268_vm12, %v290_v14, 0.0  ;;  %v296_v19 = vsel %vm268_vm12, %v291_v15, 0.0  ;;  %v298_v22 = vsel %vm268_vm12, %v292_v16, 0.0  ;;  %v300_v24 = vsel %vm268_vm12, %v293_v17, 0.0 }
 0x123   :  { %v297_v20 = vadd.f32 %v296_v19, %v295_v18  ;;  %v302_v26 = vsel %vm268_vm12, %v294_v21, 0.0 }
 0x125   :  { %v299_v23 = vadd.f32 %v298_v22, %v297_v20 }
 0x127   :  { %v301_v25 = vadd.f32 %v300_v24, %v299_v23 }
 0x129   :  { %v303_v27 = vadd.f32 %v302_v26, %v301_v25 }
 0x12b   :  { %v304_v28 = vrot.slane %v303_v27, 4 }
 0x12d   :  { %v305_v29 = vadd.f32 %v304_v28, %v303_v27 }
 0x12f   :  { %v306_v30 = vrot.slane %v305_v29, 2 }
 0x131   :  { %v307_v31 = vadd.f32 %v306_v30, %v305_v29 }
 0x133   :  { %v308_v32 = vrot.slane %v307_v31, 1 }
 0x135   :  { %v309_v33 = vadd.f32 %v308_v32, %v307_v31 }
 0x137   :  { %v310_v34 = vmul.f32 0.025, %v309_v33 }
 0x139   :  { %v311_v35 = vadd.f32 1e-05, %v310_v34 }
 0x13b   :  { %2023 = vrsqrt.f32 %v311_v35 }
 0x145   :  { %v2024_v36 = vpop.eup %2023 }
 0x146   :  { %v317_v38 = vmul.f32 %v2024_v36, %v289_v13  ;;  %v313_v39 = vmul.f32 %v2024_v36, %v285_v8  ;;  %v314_v40 = vmul.f32 %v2024_v36, %v286_v9  ;;  %v315_v41 = vmul.f32 %v2024_v36, %v287_v11  ;;  %v1941_v8 = vld [vmem:[%s2739_s7 + $0x34] ss:$8 sps:$4 sm:$0xff]   ;;  %v1939_v9 = vld [vmem:[%s2739_s7 + $0x30] ss:$8 sps:$4 sm:$0xff]  }
 0x147   :  { %v316_v44 = vmul.f32 %v2024_v36, %v288_v12  ;;  %698 = vmatprep.subr.bf16.mxu0 %v1941_v8  ;;  %v2292_v11 = vsub.s32 0, %v2170_v10  ;;  %v2295_v12 = vsub.s32 1, %v2170_v10  ;;  %v340_v13 = vld [vmem:[%s2736_s4] ss:$8 sm:$0x3] }
 0x148   :  { %v322_v45 = vmul.f32 %v1644_v37, %v313_v39  ;;  %v323_v46 = vmul.f32 %v1644_v37, %v314_v40  ;;  %v324_v47 = vmul.f32 %v1644_v37, %v315_v41  ;;  %v326_v56 = vmul.f32 %v1644_v37, %v317_v38  ;;  %699 = vmatpush1.bf16.msra.mxu0 %v1939_v9 }
 0x149   :  { %v325_v48 = vmul.f32 %v1644_v37, %v316_v44  ;;  %v345_v14 = vrot.slane %v340_v13, %v2292_v11  ;;  %v2302_v15 = vrot.slane %v340_v13, %v2295_v12  ;;  %v461_v8 = vrot.slane %v1652_v6, %v2292_v11 }
 0x14a   :  { %v331_v49 = vadd.f32 %v1645_v43, %v322_v45  ;;  %v332_v50 = vadd.f32 %v1645_v43, %v323_v46  ;;  %v333_v51 = vadd.f32 %v1645_v43, %v324_v47  ;;  %v335_v57 = vadd.f32 %v1645_v43, %v326_v56 }
 0x14b   :  { %v334_v52 = vadd.f32 %v1645_v43, %v325_v48  ;;  %v465_v9 = vrot.slane %v1652_v6, %v2295_v12  ;;  %v1976_v6 = vld [vmem:[%s2741_s9 + $0x14] ss:$8 sps:$4 sm:$0xff]  }
 0x14c   :  { %v336_v54 = vpack.c.bf16 %v332_v50, %v331_v49  ;;  %v338_v58 = vpack.c.bf16 %v335_v57, %v335_v57  ;;  %v1947_v57 = vld [vmem:[%s2740_s8] ss:$8 sps:$4 sm:$0xff]  }
 0x14d   :  { %v337_v55 = vpack.c.bf16 %v334_v52, %v333_v51  ;;  %v1944_v51 = vld [vmem:[%s2739_s7 + $0x44] ss:$8 sps:$4 sm:$0xff]   ;;  %v1942_v52 = vld [vmem:[%s2739_s7 + $0x40] ss:$8 sps:$4 sm:$0xff]  }
 0x14e   :  { %1649 = vmatmul.mubr.msk.bf16.vlgmr.msra.gmra.mrb[0].mxu1 %vm268_vm12, %v336_v54  ;;  %700 = vmatprep.subr.bf16.mxu0 %v1944_v51 }
 0x14f   :  { %414 = vmatprep.mubr.bf16.mxu1 %v2072_v42  ;;  %514 = vmatpush1.bf16.msra.mxu1 %v1921_v53  ;;  %v606_v53 = vld [vmem:[%s2739_s7 + $0x50] sm:$0x33] }
 0x150   :  { %515 = vmatprep.subr.bf16.mxu1 %v1926_v59  ;;  %701 = vmatpush1.bf16.msra.mxu0 %v1942_v52  ;;  %v1675_v54 = vcombine.high %v606_v53, %v606_v53  ;;  %v1952_v59 = vld [vmem:[%s2740_s8 + $0x14] ss:$8 sps:$4 sm:$0xff]  }
 0x152   :  { %1676 = vmatprep.subr.msk.bf16.mxu0 %vm685_vm15, %v1675_v54 }
 0x153   :  { %516 = vmatpush1.bf16.msra.mxu1 %v1924_v60  ;;  %v1950_v60 = vld [vmem:[%s2740_s8 + $0x10] ss:$8 sps:$4 sm:$0xff]  }
 0x154   :  { %1659 = vmatprep.subr.msk.bf16.mxu1 %vm506_vm13, %v1927_v61  ;;  %v1955_v61 = vld [vmem:[%s2740_s8 + $0x24] ss:$8 sps:$4 sm:$0xff]  }
 0x156   :  { %1650 = vmatmul.mubr.msk.bf16.gmra.mrb[4].mxu1 %vm268_vm12, %v337_v55  ;;  %v1674_v55 = vcombine.low %v606_v53, %v606_v53 }
 0x157   :  { %424 = vmatprep.mubr.bf16.mxu1 %v2072_v42  ;;  %518 = vmatpush1.bf16.msra.mxu1 %v508_v63  ;;  %v1958_v63 = vld [vmem:[%s2740_s8 + $0x34] ss:$8 sps:$4 sm:$0xff]  }
 0x158   :  { %v687_v56 = vsel %vm685_vm15, %v1674_v55, 0 }
 0x159   :  { %703 = vmatpush1.bf16.msra.mxu0 %v687_v56 }
 0x15e   :  { %1651 = vmatmul.mubr.msk.bf16.gmra.mrb[8].mxu1 %vm268_vm12, %v338_v58  ;;  %v1949_v58 = vld [vmem:[%s2740_s8 + $0x4] ss:$8 sps:$4 sm:$0xff]  }
 0x15f   :  { %545 = vmatprep.mubr.bf16.mxu1 %v2072_v42  ;;  %899 = vmatprep.subr.bf16.mxu1 %v1949_v58 }
 0x221   :  { %v406_v16 = vpop.f32.mrb[0].mxu1 }
 0x222   :  { %v407_v17 = vadd.f32 %v406_v16, %v345_v14  ;;  %v408_v18 = vpop.f32.mrb[1].mxu1 }
 0x223   :  { %v409_v19 = vadd.f32 %v408_v18, %v2302_v15  ;;  %v410_v20 = vpop.f32.mrb[2].mxu1 }
 0x224   :  { %v411_v21 = vadd.f32 %v410_v20, %v345_v14  ;;  %v412_v22 = vpop.f32.mrb[3].mxu1  ;;  %v433_v23 = vmax.f32 %v407_v17, 0.0 }
 0x225   :  { %v413_v10 = vadd.f32 %v412_v22, %v2302_v15  ;;  %v434_v25 = vmax.f32 %v409_v19, 0.0 }
 0x226   :  { %v435_v24 = vmax.f32 %v411_v21, 0.0 }
 0x227   :  { %v436_v26 = vmax.f32 %v413_v10, 0.0 }
 0x228   :  { %v2306_v27 = vpack.c.bf16 %v435_v24, %v433_v23 }
 0x229   :  { %v2308_v28 = vpack.c.bf16 %v436_v26, %v434_v25  ;;  %v416_v29 = vpop.f32.mrb[4].mxu1 }
 0x22a   :  { %v417_v30 = vadd.f32 %v416_v29, %v345_v14  ;;  %v418_v31 = vpop.f32.mrb[5].mxu1  ;;  %1660 = vmatmul.mubr.msk.bf16.vlgmr.msra.gmra.mrb[12].mxu1 %vm496_vm14, %v2306_v27 }
 0x22b   :  { %v419_v32 = vadd.f32 %v418_v31, %v2302_v15  ;;  %v420_v33 = vpop.f32.mrb[6].mxu1  ;;  %555 = vmatprep.mubr.bf16.mxu1 %v2072_v42  ;;  %900 = vmatpush1.bf16.msra.mxu1 %v1947_v57 }
 0x22c   :  { %v421_v34 = vadd.f32 %v420_v33, %v345_v14  ;;  %v422_v35 = vpop.f32.mrb[7].mxu1  ;;  %v437_v37 = vmax.f32 %v417_v30, 0.0  ;;  %901 = vmatprep.subr.bf16.mxu1 %v1952_v59 }
 0x22d   :  { %v423_v36 = vadd.f32 %v422_v35, %v2302_v15  ;;  %v438_v39 = vmax.f32 %v419_v32, 0.0 }
 0x22e   :  { %v439_v38 = vmax.f32 %v421_v34, 0.0 }
 0x22f   :  { %v440_v40 = vmax.f32 %v423_v36, 0.0  ;;  %902 = vmatpush1.bf16.msra.mxu1 %v1950_v60 }
 0x230   :  { %v2315_v41 = vpack.c.bf16 %v439_v38, %v437_v37  ;;  %903 = vmatprep.subr.bf16.mxu1 %v1955_v61 }
 0x231   :  { %v2317_v43 = vpack.c.bf16 %v440_v40, %v438_v39  ;;  %v426_v44 = vpop.f32.mrb[8].mxu1 }
 0x232   :  { %v427_v45 = vadd.f32 %v426_v44, %v345_v14  ;;  %v2319_v46 = vpop.f32.mrb[9].mxu1  ;;  %1661 = vmatmul.mubr.msk.bf16.gmra.mrb[16].mxu1 %vm496_vm14, %v2315_v41 }
 0x233   :  { %v430_v47 = vpop.f32.mrb[10].mxu1  ;;  %565 = vmatprep.mubr.bf16.mxu1 %v2072_v42  ;;  %904 = vmatpush1.bf16.msra.mxu1 %v1953_v62 }
 0x234   :  { %v441_v48 = vmax.f32 %v427_v45, 0.0  ;;  %v431_v49 = vpop.f32.mrb[11].mxu1  ;;  %905 = vmatprep.subr.bf16.mxu1 %v1958_v63  ;;  %v1967_v63 = vld [vmem:[%s2740_s8 + $0x64] ss:$8 sps:$4 sm:$0xff]  }
 0x236   :  { %v2324_v50 = vpack.c.bf16 %v441_v48, %v441_v48 }
 0x237   :  { %906 = vmatpush1.bf16.msra.mxu1 %v1956_v0  ;;  %v1965_v0 = vld [vmem:[%s2740_s8 + $0x60] ss:$8 sps:$4 sm:$0xff]  }
 0x238   :  { %907 = vmatprep.subr.bf16.mxu1 %v1961_v1  ;;  %v1968_v1 = vld [vmem:[%s2740_s8 + $0x74] ss:$8 sps:$4 sm:$0x7f]  }
 0x23a   :  { %1662 = vmatmul.mubr.msk.bf16.gmra.mrb[20].mxu1 %vm496_vm14, %v2324_v50 }
 0x23b   :  { %931 = vmatprep.mubr.bf16.mxu1 %v2072_v42  ;;  %908 = vmatpush1.bf16.msra.mxu1 %v1959_v2 }
 0x23c   :  { %909 = vmatprep.subr.bf16.mxu1 %v1964_v3  ;;  %v1971_v3 = vld [vmem:[%s2741_s9] ss:$8 sps:$4 sm:$0xff]  }
 0x23f   :  { %910 = vmatpush1.bf16.msra.mxu1 %v1962_v5  ;;  %v1973_v5 = vld [vmem:[%s2741_s9 + $0x4] ss:$8 sps:$4 sm:$0xff]  }
 0x240   :  { %911 = vmatprep.subr.bf16.mxu1 %v1967_v63  ;;  %1137 = vmatprep.subr.bf16.mxu0 %v1973_v5 }
 0x243   :  { %912 = vmatpush1.bf16.msra.mxu1 %v1965_v0 }
 0x244   :  { %1697 = vmatprep.subr.msk.bf16.mxu1 %vm892_vm3, %v1968_v1 }
 0x2fd   :  { %v547_v13 = vpop.f32.mrb[12].mxu1 }
 0x2fe   :  { %v548_v14 = vadd.f32 %v547_v13, %v461_v8  ;;  %v549_v16 = vpop.f32.mrb[13].mxu1  ;;  %v1977_v13 = vld [vmem:[%s2741_s9 + $0x20] ss:$8 sps:$4 sm:$0xff]  }
 0x2ff   :  { %v550_v17 = vadd.f32 %v549_v16, %v465_v9  ;;  %v551_v18 = vpop.f32.mrb[14].mxu1  ;;  %v1980_v16 = vld [vmem:[%s2741_s9 + $0x30] ss:$8 sps:$4 sm:$0xff]  }
 0x300   :  { %v552_v19 = vadd.f32 %v551_v18, %v461_v8  ;;  %v553_v20 = vpop.f32.mrb[15].mxu1  ;;  %v574_v22 = vmax.f32 %v548_v14, 0.0  ;;  %v1982_v14 = vld [vmem:[%s2741_s9 + $0x34] ss:$8 sps:$4 sm:$0xff]   ;;  %v1983_v18 = vld [vmem:[%s2741_s9 + $0x40] ss:$8 sps:$4 sm:$0xff]  }
 0x301   :  { %v554_v21 = vadd.f32 %v553_v20, %v465_v9  ;;  %v575_v23 = vmax.f32 %v550_v17, 0.0  ;;  %v1985_v17 = vld [vmem:[%s2741_s9 + $0x44] ss:$8 sps:$4 sm:$0xff]   ;;  %v1986_v20 = vld [vmem:[%s2741_s9 + $0x50] ss:$8 sps:$4 sm:$0xff]  }
 0x302   :  { %v576_v10 = vmax.f32 %v552_v19, 0.0  ;;  %v1988_v19 = vld [vmem:[%s2741_s9 + $0x54] ss:$8 sps:$4 sm:$0xff]  }
 0x303   :  { %v577_v24 = vmax.f32 %v554_v21, 0.0  ;;  %v1991_v21 = vld [vmem:[%s2741_s9 + $0x64] ss:$8 sps:$4 sm:$0xff]  }
 0x304   :  { %v584_v25 = vpack.c.bf16 %v576_v10, %v574_v22  ;;  %v1989_v22 = vld [vmem:[%s2741_s9 + $0x60] ss:$8 sps:$4 sm:$0xff]   ;;  %v1994_v10 = vld [vmem:[%s2741_s9 + $0x74] ss:$8 sps:$4 sm:$0xff]  }
 0x305   :  { %v2379_v26 = vpack.c.bf16 %v577_v24, %v575_v23  ;;  %v557_v29 = vpop.f32.mrb[16].mxu1  ;;  %v1992_v23 = vld [vmem:[%s2741_s9 + $0x70] ss:$8 sps:$4 sm:$0xff]   ;;  %v1663_v24 = vld [vmem:[%s2736_s4 + $0x2] ss:$8 sm:$0x3] }
 0x306   :  { %v2382_v30 = vadd.bf16 %v584_v25, %v2306_v27  ;;  %v558_v31 = vadd.f32 %v557_v29, %v461_v8  ;;  %v559_v32 = vpop.f32.mrb[17].mxu1  ;;  %v429_v27 = vadd.f32 %v2319_v46, %v2302_v15  ;;  %v613_v25 = vrot.slane %v1663_v24, %v2292_v11 }
 0x307   :  { %v591_v33 = vadd.bf16 %v2379_v26, %v2308_v28  ;;  %v560_v34 = vadd.f32 %v559_v32, %v465_v9  ;;  %v561_v35 = vpop.f32.mrb[18].mxu1  ;;  %v617_v29 = vrot.slane %v1663_v24, %v2295_v12  ;;  %v2007_v24 = vld [vmem:[%s2742_s10 + $0x20] sm:$0xff]  }
 0x308   :  { %v562_v36 = vadd.f32 %v561_v35, %v461_v8  ;;  %v563_v37 = vpop.f32.mrb[19].mxu1  ;;  %1677 = vmatmul.mubr.msk.bf16.vlgmr.msra.gmra.mrb[12].mxu0 %vm675_vm2, %v2382_v30  ;;  %v578_v39 = vmax.f32 %v558_v31, 0.0  ;;  %v442_v54 = vmax.f32 %v429_v27, 0.0 }
 0x309   :  { %v564_v38 = vadd.f32 %v563_v37, %v465_v9  ;;  %734 = vmatprep.mubr.bf16.mxu0 %v2072_v42  ;;  %v579_v44 = vmax.f32 %v560_v34, 0.0  ;;  %1138 = vmatpush1.bf16.msra.mxu0 %v1971_v3 }
 0x30a   :  { %v580_v40 = vmax.f32 %v562_v36, 0.0  ;;  %v2401_v60 = vpack.c.bf16 %v442_v54, %v442_v54  ;;  %1139 = vmatprep.subr.bf16.mxu0 %v1976_v6 }
 0x30b   :  { %v581_v45 = vmax.f32 %v564_v38, 0.0 }
 0x30c   :  { %v586_v47 = vpack.c.bf16 %v580_v40, %v578_v39 }
 0x30d   :  { %v2391_v48 = vpack.c.bf16 %v581_v45, %v579_v44  ;;  %v567_v49 = vpop.f32.mrb[20].mxu1 }
 0x30e   :  { %v2394_v51 = vadd.bf16 %v586_v47, %v2315_v41  ;;  %v568_v52 = vadd.f32 %v567_v49, %v461_v8  ;;  %v569_v53 = vpop.f32.mrb[21].mxu1  ;;  %v1974_v8 = vld [vmem:[%s2741_s9 + $0x10] ss:$8 sps:$4 sm:$0xff]  }
 0x30f   :  { %v593_v55 = vadd.bf16 %v2391_v48, %v2317_v43  ;;  %v570_v56 = vadd.f32 %v569_v53, %v465_v9  ;;  %v571_v57 = vpop.f32.mrb[22].mxu1  ;;  %v1979_v9 = vld [vmem:[%s2741_s9 + $0x24] ss:$8 sps:$4 sm:$0xff]   ;;  %1140 = vmatpush1.bf16.msra.mxu0 %v1974_v8 }
 0x310   :  { %v582_v58 = vmax.f32 %v568_v52, 0.0  ;;  %v572_v59 = vpop.f32.mrb[23].mxu1  ;;  %1678 = vmatmul.mubr.msk.bf16.gmra.mrb[16].mxu0 %vm675_vm2, %v2394_v51  ;;  %1141 = vmatprep.subr.bf16.mxu0 %v1979_v9  ;;  %v1997_v48 = vld [vmem:[%s2741_s9 + $0x84] ss:$8 sps:$4 sm:$0xff]  }
 0x311   :  { %v583_v15 = vmax.f32 %v570_v56, 0.0  ;;  %744 = vmatprep.mubr.bf16.mxu0 %v2072_v42 }
 0x312   :  { %v588_v46 = vpack.c.bf16 %v582_v58, %v582_v58 }
 0x313   :  { %v2403_v41 = vpack.c.bf16 %v583_v15, %v583_v15  ;;  %1142 = vmatpush1.bf16.msra.mxu0 %v1977_v13 }
 0x314   :  { %v2408_v62 = vadd.bf16 %v588_v46, %v2324_v50  ;;  %v1970_v50 = vld [vmem:[%s2740_s8 + $0x70] ss:$8 sps:$4 sm:$0x7f]   ;;  %1143 = vmatprep.subr.bf16.mxu0 %v1982_v14 }
 0x315   :  { %v595_v61 = vadd.bf16 %v2403_v41, %v2401_v60  ;;  %v894_v2 = vsel %vm892_vm3, %v1970_v50, 0  ;;  %v2000_v60 = vld [vmem:[%s2741_s9 + $0x94] ss:$8 sps:$4 sm:$0xff]   ;;  %v1998_v41 = vld [vmem:[%s2741_s9 + $0x90] ss:$8 sps:$4 sm:$0xff]  }
 0x316   :  { %914 = vmatpush1.bf16.msra.mxu1 %v894_v2 }
 0x317   :  { %1342 = vmatprep.subr.bf16.mxu1 %v2072_v42  ;;  %1144 = vmatpush1.bf16.msra.mxu0 %v1980_v16 }
 0x318   :  { %1679 = vmatmul.mubr.msk.bf16.gmra.mrb[20].mxu0 %vm675_vm2, %v2408_v62  ;;  %1145 = vmatprep.subr.bf16.mxu0 %v1985_v17 }
 0x31b   :  { %1146 = vmatpush1.bf16.msra.mxu0 %v1983_v18 }
 0x31c   :  { %1147 = vmatprep.subr.bf16.mxu0 %v1988_v19 }
 0x31f   :  { %1148 = vmatpush1.bf16.msra.mxu0 %v1986_v20 }
 0x320   :  { %1149 = vmatprep.subr.bf16.mxu0 %v1991_v21  ;;  %v2003_v21 = vld [vmem:[%s2742_s10] sm:$0xff]  }
 0x323   :  { %1150 = vmatpush1.bf16.msra.mxu0 %v1989_v22  ;;  %v2004_v22 = vld [vmem:[%s2742_s10 + $0x8] sm:$0xff]  }
 0x324   :  { %1151 = vmatprep.subr.bf16.mxu0 %v1994_v10  ;;  %v2005_v10 = vld [vmem:[%s2742_s10 + $0x10] sm:$0xff]  }
 0x327   :  { %1152 = vmatpush1.bf16.msra.mxu0 %v1992_v23  ;;  %v2006_v23 = vld [vmem:[%s2742_s10 + $0x18] sm:$0xff]  }
 0x328   :  { %1153 = vmatprep.subr.bf16.mxu0 %v1997_v48 }
 0x3db   :  { %v726_v31 = vpop.f32.mrb[12].mxu0 }
 0x3dc   :  { %v727_v32 = vadd.f32 %v726_v31, %v613_v25  ;;  %v728_v34 = vpop.f32.mrb[13].mxu0  ;;  %v2010_v31 = vld [vmem:[%s2742_s10 + $0x38] sm:$0xff]  }
 0x3dd   :  { %v729_v35 = vadd.f32 %v728_v34, %v617_v29  ;;  %v730_v36 = vpop.f32.mrb[14].mxu0  ;;  %v2012_v34 = vld [vmem:[%s2742_s10 + $0x48] sm:$0xff]  }
 0x3de   :  { %v731_v37 = vadd.f32 %v730_v36, %v613_v25  ;;  %v732_v38 = vpop.f32.mrb[15].mxu0  ;;  %v753_v40 = vmax.f32 %v727_v32, 0.0  ;;  %v2011_v32 = vld [vmem:[%s2742_s10 + $0x40] sm:$0xff]  }
 0x3df   :  { %v733_v39 = vadd.f32 %v732_v38, %v617_v29  ;;  %v754_v44 = vmax.f32 %v729_v35, 0.0  ;;  %v2013_v35 = vld [vmem:[%s2742_s10 + $0x50] sm:$0xff]   ;;  %v1680_v36 = vld [vmem:[%s2736_s4 + $0x3] ss:$8 sm:$0x3] }
 0x3e0   :  { %v755_v27 = vmax.f32 %v731_v37, 0.0  ;;  %v797_v37 = vrot.slane %v1680_v36, %v2292_v11  ;;  %v801_v38 = vrot.slane %v1680_v36, %v2295_v12  ;;  %v1414_v36 = vld [vmem:[%s2744_s12 + $0x30] sm:$0xff] }
 0x3e1   :  { %v756_v45 = vmax.f32 %v733_v39, 0.0 }
 0x3e2   :  { %v763_v47 = vpack.c.bf16 %v755_v27, %v753_v40 }
 0x3e3   :  { %v764_v49 = vpack.c.bf16 %v756_v45, %v754_v44  ;;  %v736_v52 = vpop.f32.mrb[16].mxu0 }
 0x3e4   :  { %v2479_v53 = vadd.bf16 %v763_v47, %v2382_v30  ;;  %v737_v54 = vadd.f32 %v736_v52, %v613_v25  ;;  %v738_v56 = vpop.f32.mrb[17].mxu0 }
 0x3e5   :  { %v2484_v57 = vadd.bf16 %v764_v49, %v591_v33  ;;  %v739_v58 = vadd.f32 %v738_v56, %v617_v29  ;;  %v740_v59 = vpop.f32.mrb[18].mxu0 }
 0x3e6   :  { %v741_v15 = vadd.f32 %v740_v59, %v613_v25  ;;  %v742_v46 = vpop.f32.mrb[19].mxu0  ;;  %1698 = vmatmul.mubr.msk.bf16.vlgmr.msra.gmra.mrb[24].mxu1 %vm882_vm4, %v2479_v53  ;;  %v757_v0 = vmax.f32 %v737_v54, 0.0 }
 0x3e7   :  { %v743_v63 = vadd.f32 %v742_v46, %v617_v29  ;;  %941 = vmatprep.mubr.bf16.mxu1 %v2072_v42  ;;  %v758_v1 = vmax.f32 %v739_v58, 0.0  ;;  %1343 = vmatpush1.bf16.msra.mxu1 %v2003_v21 }
 0x3e8   :  { %v759_v30 = vmax.f32 %v741_v15, 0.0  ;;  %1344 = vmatprep.subr.bf16.mxu1 %v2072_v42 }
 0x3e9   :  { %v760_v50 = vmax.f32 %v743_v63, 0.0 }
 0x3ea   :  { %v765_v2 = vpack.c.bf16 %v759_v30, %v757_v0 }
 0x3eb   :  { %v766_v3 = vpack.c.bf16 %v760_v50, %v758_v1  ;;  %v746_v5 = vpop.f32.mrb[20].mxu0  ;;  %1345 = vmatpush1.bf16.msra.mxu1 %v2004_v22 }
 0x3ec   :  { %v2490_v28 = vadd.bf16 %v765_v2, %v2394_v51  ;;  %v747_v26 = vadd.f32 %v746_v5, %v613_v25  ;;  %v748_v33 = vpop.f32.mrb[21].mxu0  ;;  %1346 = vmatprep.subr.bf16.mxu1 %v2072_v42  ;;  %v2008_v25 = vld [vmem:[%s2742_s10 + $0x28] sm:$0xff]  }
 0x3ed   :  { %v2495_v6 = vadd.bf16 %v766_v3, %v593_v55  ;;  %v749_v8 = vadd.f32 %v748_v33, %v617_v29  ;;  %v750_v9 = vpop.f32.mrb[22].mxu0  ;;  %v1995_v55 = vld [vmem:[%s2741_s9 + $0x80] ss:$8 sps:$4 sm:$0xff]   ;;  %v2009_v29 = vld [vmem:[%s2742_s10 + $0x30] sm:$0xff]  }
 0x3ee   :  { %v761_v13 = vmax.f32 %v747_v26, 0.0  ;;  %v751_v14 = vpop.f32.mrb[23].mxu0  ;;  %1699 = vmatmul.mubr.msk.bf16.gmra.mrb[28].mxu1 %vm882_vm4, %v2490_v28  ;;  %1154 = vmatpush1.bf16.msra.mxu0 %v1995_v55 }
 0x3ef   :  { %v762_v16 = vmax.f32 %v749_v8, 0.0  ;;  %951 = vmatprep.mubr.bf16.mxu1 %v2072_v42  ;;  %1155 = vmatprep.subr.bf16.mxu0 %v2000_v60 }
 0x3f0   :  { %v767_v17 = vpack.c.bf16 %v761_v13, %v761_v13  ;;  %1347 = vmatpush1.bf16.msra.mxu1 %v2005_v10 }
 0x3f1   :  { %v768_v51 = vpack.c.bf16 %v762_v16, %v762_v16  ;;  %1348 = vmatprep.subr.bf16.mxu1 %v2072_v42 }
 0x3f2   :  { %v2506_v43 = vadd.bf16 %v767_v17, %v2408_v62  ;;  %1156 = vmatpush1.bf16.msra.mxu0 %v1998_v41 }
 0x3f3   :  { %v2503_v18 = vadd.bf16 %v768_v51, %v595_v61  ;;  %v1002_v61 = vld [vmem:[%s2741_s9 + $0xa0] sm:$0xff] }
 0x3f4   :  { %v1723_v62 = vcombine.high %v1002_v61, %v1002_v61  ;;  %v1722_v19 = vcombine.low %v1002_v61, %v1002_v61  ;;  %1349 = vmatpush1.bf16.msra.mxu1 %v2006_v23  ;;  %v1408_v23 = vld [vmem:[%s2744_s12] sm:$0xff] }
 0x3f5   :  { %1350 = vmatprep.subr.bf16.mxu1 %v2072_v42 }
 0x3f6   :  { %1700 = vmatmul.mubr.msk.bf16.gmra.mrb[32].mxu1 %vm882_vm4, %v2506_v43  ;;  %1724 = vmatprep.subr.msk.bf16.mxu0 %vm172_vm0, %v1723_v62  ;;  %v1132_v20 = vsel %vm172_vm0, %v1722_v19, 0 }
 0x3f7   :  { %1158 = vmatpush1.bf16.msra.mxu0 %v1132_v20 }
 0x3f8   :  { %1888 = vmatprep.subr.bf16.mxu0 %v2068_v4  ;;  %1351 = vmatpush1.bf16.msra.mxu1 %v2007_v24  ;;  %v1409_v24 = vld [vmem:[%s2744_s12 + $0x8] sm:$0xff] }
 0x3f9   :  { %1352 = vmatprep.subr.bf16.mxu1 %v2072_v42 }
 0x3fc   :  { %1353 = vmatpush1.bf16.msra.mxu1 %v2008_v25  ;;  %v1410_v25 = vld [vmem:[%s2744_s12 + $0x10] sm:$0xff] }
 0x3fd   :  { %1354 = vmatprep.subr.bf16.mxu1 %v2072_v42 }
 0x400   :  { %1355 = vmatpush1.bf16.msra.mxu1 %v2009_v29  ;;  %v1411_v29 = vld [vmem:[%s2744_s12 + $0x18] sm:$0xff] }
 0x401   :  { %1356 = vmatprep.subr.bf16.mxu1 %v2072_v42 }
 0x404   :  { %1357 = vmatpush1.bf16.msra.mxu1 %v2010_v31  ;;  %v1892_v31 = vpack.c.bf16 %v1411_v29, %v1410_v25 }
 0x405   :  { %1358 = vmatprep.subr.bf16.mxu1 %v2072_v42 }
 0x408   :  { %1359 = vmatpush1.bf16.msra.mxu1 %v2011_v32  ;;  %v1412_v32 = vld [vmem:[%s2744_s12 + $0x20] sm:$0xff] }
 0x409   :  { %1360 = vmatprep.subr.bf16.mxu1 %v2072_v42 }
 0x40c   :  { %1361 = vmatpush1.bf16.msra.mxu1 %v2012_v34  ;;  %v1413_v34 = vld [vmem:[%s2744_s12 + $0x28] sm:$0xff] }
 0x40d   :  { %1362 = vmatprep.subr.bf16.mxu1 %v2072_v42 }
 0x410   :  { %1363 = vmatpush1.bf16.msra.mxu1 %v2013_v35  ;;  %v1895_v35 = vpack.c.bf16 %v1413_v34, %v1412_v32 }
 0x411   :  { %1364 = vmatprep.subr.bf16.mxu1 %v2072_v42 }
 0x4b9   :  { %v933_v39 = vpop.f32.mrb[24].mxu1 }
 0x4ba   :  { %v934_v40 = vadd.f32 %v933_v39, %v797_v37  ;;  %v935_v27 = vpop.f32.mrb[25].mxu1  ;;  %v1416_v39 = vld [vmem:[%s2744_s12 + $0x40] sm:$0xff] }
 0x4bb   :  { %v936_v44 = vadd.f32 %v935_v27, %v801_v38  ;;  %v937_v45 = vpop.f32.mrb[26].mxu1 }
 0x4bc   :  { %v938_v47 = vadd.f32 %v937_v45, %v797_v37  ;;  %v939_v49 = vpop.f32.mrb[27].mxu1  ;;  %v960_v54 = vmax.f32 %v934_v40, 0.0  ;;  %v1417_v40 = vld [vmem:[%s2744_s12 + $0x48] sm:$0xff]  ;;  %v1419_v45 = vld [vmem:[%s2744_s12 + $0x58] sm:$0xff] }
 0x4bd   :  { %v940_v52 = vadd.f32 %v939_v49, %v801_v38  ;;  %v961_v58 = vmax.f32 %v936_v44, 0.0  ;;  %v1901_v27 = vpack.c.bf16 %v1417_v40, %v1416_v39  ;;  %v1418_v44 = vld [vmem:[%s2744_s12 + $0x50] sm:$0xff]  ;;  %v1701_v49 = vld [vmem:[%s2736_s4 + $0x4] ss:$8 sm:$0x3] }
 0x4be   :  { %v962_v56 = vmax.f32 %v938_v47, 0.0  ;;  %v1904_v47 = vpack.c.bf16 %v1419_v45, %v1418_v44  ;;  %v1400_v39 = vld [vmem:[%s2743_s11 + $0x10] sm:$0xff] }
 0x4bf   :  { %v963_v59 = vmax.f32 %v940_v52, 0.0  ;;  %v1009_v52 = vrot.slane %v1701_v49, %v2292_v11 }
 0x4c0   :  { %v970_v15 = vpack.c.bf16 %v962_v56, %v960_v54  ;;  %v1013_v54 = vrot.slane %v1701_v49, %v2295_v12 }
 0x4c1   :  { %v971_v46 = vpack.c.bf16 %v963_v59, %v961_v58  ;;  %v943_v63 = vpop.f32.mrb[28].mxu1 }
 0x4c2   :  { %v944_v0 = vadd.f32 %v943_v63, %v797_v37  ;;  %v945_v30 = vpop.f32.mrb[29].mxu1  ;;  %v2581_v3 = vadd.bf16 %v970_v15, %v2479_v53 }
 0x4c3   :  { %v2578_v1 = vadd.bf16 %v971_v46, %v2484_v57  ;;  %v946_v50 = vadd.f32 %v945_v30, %v801_v38  ;;  %v947_v2 = vpop.f32.mrb[30].mxu1 }
 0x4c4   :  { %v948_v5 = vadd.f32 %v947_v2, %v797_v37  ;;  %v949_v26 = vpop.f32.mrb[31].mxu1  ;;  %v964_v8 = vmax.f32 %v944_v0, 0.0 }
 0x4c5   :  { %v950_v33 = vadd.f32 %v949_v26, %v801_v38  ;;  %1725 = vmatprep.mubr.msk.bf16.mxu0 %vm1121_vm5, %v2578_v1  ;;  %v965_v13 = vmax.f32 %v946_v50, 0.0 }
 0x4c6   :  { %v966_v9 = vmax.f32 %v948_v5, 0.0  ;;  %1170 = vmatmul.mubr.bf16.vlgmr.msra.gmra.mrb[24].mxu0 %v2581_v3 }
 0x4c7   :  { %v967_v14 = vmax.f32 %v950_v33, 0.0 }
 0x4c8   :  { %v972_v16 = vpack.c.bf16 %v966_v9, %v964_v8 }
 0x4c9   :  { %v973_v57 = vpack.c.bf16 %v967_v14, %v965_v13  ;;  %v953_v17 = vpop.f32.mrb[32].mxu1 }
 0x4ca   :  { %v954_v51 = vadd.f32 %v953_v17, %v797_v37  ;;  %v955_v48 = vpop.f32.mrb[33].mxu1  ;;  %v2590_v62 = vadd.bf16 %v972_v16, %v2490_v28  ;;  %v2014_v28 = vld [vmem:[%s2742_s10 + $0x58] sm:$0xff]  }
 0x4cb   :  { %v2587_v53 = vadd.bf16 %v973_v57, %v2495_v6  ;;  %v956_v55 = vadd.f32 %v955_v48, %v801_v38  ;;  %v957_v60 = vpop.f32.mrb[34].mxu1  ;;  %1365 = vmatpush1.bf16.msra.mxu1 %v2014_v28  ;;  %v1415_v37 = vld [vmem:[%s2744_s12 + $0x38] sm:$0xff] }
 0x4cc   :  { %v968_v41 = vmax.f32 %v954_v51, 0.0  ;;  %v958_v61 = vpop.f32.mrb[35].mxu1  ;;  %1366 = vmatprep.subr.bf16.mxu1 %v2072_v42  ;;  %v1898_v38 = vpack.c.bf16 %v1415_v37, %v1414_v36 }
 0x4cd   :  { %v969_v19 = vmax.f32 %v956_v55, 0.0  ;;  %1726 = vmatprep.mubr.msk.bf16.mxu0 %vm1121_vm5, %v2587_v53 }
 0x4ce   :  { %1180 = vmatmul.mubr.bf16.gmra.mrb[28].mxu0 %v2590_v62  ;;  %v974_v21 = vpack.c.bf16 %v968_v41, %v968_v41 }
 0x4cf   :  { %v975_v20 = vpack.c.bf16 %v969_v19, %v969_v19 }
 0x4d0   :  { %v2601_v6 = vadd.bf16 %v974_v21, %v2506_v43  ;;  %v2016_v43 = vld [vmem:[%s2742_s10 + $0x68] ss:$0 sps:$4 sm:$0x11]  }
 0x4d1   :  { %v2596_v22 = vadd.bf16 %v975_v20, %v2503_v18  ;;  %v2015_v18 = vld [vmem:[%s2742_s10 + $0x60] sm:$0xff]   ;;  %v1340_v10 = vsel %vm1338_vm6, %v2016_v43, 0 }
 0x4d2   :  { %1367 = vmatpush1.bf16.msra.mxu1 %v2015_v18 }
 0x4d3   :  { %1727 = vmatprep.mubr.msk.bf16.mxu0 %vm1121_vm5, %v2596_v22  ;;  %1368 = vmatprep.subr.bf16.mxu1 %v2072_v42  ;;  %v1889_v42 = vpack.c.bf16 %v1409_v24, %v1408_v23 }
 0x4d5   :  { %1890 = vmatpush3.bf16.msra.mxu0 %v1889_v42 }
 0x4d6   :  { %1190 = vmatmul.mubr.bf16.gmra.mrb[32].mxu0 %v2601_v6  ;;  %1369 = vmatpush1.bf16.msra.mxu1 %v1340_v10 }
 0x4d7   :  { %1847 = vmatprep.mubr.msk.f32.mxu0 %vm2069_vm1, %v2070_v7  ;;  %1891 = vmatprep.subr.bf16.mxu0 %v2068_v4 }
 0x4d9   :  { %1893 = vmatpush3.bf16.msra.mxu0 %v1892_v31 }
 0x4da   :  { %1894 = vmatprep.subr.bf16.mxu0 %v2068_v4 }
 0x4dd   :  { %1896 = vmatpush3.bf16.msra.mxu0 %v1895_v35 }
 0x4de   :  { %1897 = vmatprep.subr.bf16.mxu0 %v2068_v4 }
 0x4e1   :  { %1899 = vmatpush3.bf16.msra.mxu0 %v1898_v38 }
 0x4e2   :  { %1900 = vmatprep.subr.bf16.mxu0 %v2068_v4 }
 0x4e5   :  { %1902 = vmatpush3.bf16.msra.mxu0 %v1901_v27 }
 0x4e6   :  { %1903 = vmatprep.subr.bf16.mxu0 %v2068_v4 }
 0x4e9   :  { %1905 = vmatpush3.bf16.msra.mxu0 %v1904_v47  ;;  %v1401_v47 = vld [vmem:[%s2743_s11 + $0x18] sm:$0xff] }
 0x4ea   :  { %1845 = vmatprep.subr.mxu0 %v2070_v7 }
 0x599   :  { %v1171_v56 = vpop.f32.mrb[24].mxu0 }
 0x59a   :  { %v1172_v58 = vadd.f32 %v1171_v56, %v1009_v52  ;;  %v1173_v59 = vpop.f32.mrb[25].mxu0 }
 0x59b   :  { %v1174_v15 = vadd.f32 %v1173_v59, %v1013_v54  ;;  %v1175_v46 = vpop.f32.mrb[26].mxu0 }
 0x59c   :  { %v1176_v63 = vadd.f32 %v1175_v46, %v1009_v52  ;;  %v1177_v0 = vpop.f32.mrb[27].mxu0  ;;  %v1198_v50 = vmax.f32 %v1172_v58, 0.0 }
 0x59d   :  { %v1178_v30 = vadd.f32 %v1177_v0, %v1013_v54  ;;  %v1199_v5 = vmax.f32 %v1174_v15, 0.0 }
 0x59e   :  { %v1200_v2 = vmax.f32 %v1176_v63, 0.0 }
 0x59f   :  { %v1201_v26 = vmax.f32 %v1178_v30, 0.0 }
 0x5a0   :  { %v1208_v33 = vpack.c.bf16 %v1200_v2, %v1198_v50 }
 0x5a1   :  { %v1209_v8 = vpack.c.bf16 %v1201_v26, %v1199_v5  ;;  %v1181_v9 = vpop.f32.mrb[28].mxu0 }
 0x5a2   :  { %v1182_v13 = vadd.f32 %v1181_v9, %v1009_v52  ;;  %v1183_v14 = vpop.f32.mrb[29].mxu0  ;;  %v1214_v57 = vadd.bf16 %v1208_v33, %v2581_v3 }
 0x5a3   :  { %v1215_v11 = vadd.bf16 %v1209_v8, %v2578_v1  ;;  %v1184_v12 = vadd.f32 %v1183_v14, %v1013_v54  ;;  %v1185_v16 = vpop.f32.mrb[30].mxu0 }
 0x5a4   :  { %v1186_v17 = vadd.f32 %v1185_v16, %v1009_v52  ;;  %v1187_v51 = vpop.f32.mrb[31].mxu0  ;;  %v1202_v55 = vmax.f32 %v1182_v13, 0.0 }
 0x5a5   :  { %v1188_v48 = vadd.f32 %v1187_v51, %v1013_v54  ;;  %1742 = vmatprep.mubr.msk.bf16.mxu1 %vm1328_vm7, %v1215_v11  ;;  %v1203_v41 = vmax.f32 %v1184_v12, 0.0  ;;  %v1531_v11 = vld [vmem:[%s2745_s13] sm:$0x3]  ;;  %s2073_s13 = smov [#allocation5]  }
 0x5a6   :  { %v1204_v60 = vmax.f32 %v1186_v17, 0.0  ;;  %1375 = vmatmul.mubr.bf16.vlgmr.msra.gmra.mrb[36].mxu1 %v1214_v57  ;;  %s1628_s16 = sshll.u32 %s2073_s13, 4  ;;  %s1629_s16 = int_to_ptr.vmem [resolvable:$true] %s1628_s16 }
 0x5a7   :  { %v1205_v61 = vmax.f32 %v1188_v48, 0.0  ;;  %p2046_p8 = scmp.lt.s32.totalorder %s1629_s16, %s1629_s16 }
 0x5a8   :  { %v1210_v19 = vpack.c.bf16 %v1204_v60, %v1202_v55 }
 0x5a9   :  { %v1211_v20 = vpack.c.bf16 %v1205_v61, %v1203_v41  ;;  %v1191_v21 = vpop.f32.mrb[32].mxu0 }
 0x5aa   :  { %v1192_v28 = vadd.f32 %v1191_v21, %v1009_v52  ;;  %v1193_v18 = vpop.f32.mrb[33].mxu0  ;;  %v1216_v24 = vadd.bf16 %v1210_v19, %v2590_v62  ;;  %v1398_v62 = vld [vmem:[%s2743_s11] sm:$0xff] }
 0x5ab   :  { %v1217_v1 = vadd.bf16 %v1211_v20, %v2587_v53  ;;  %v1194_v43 = vadd.f32 %v1193_v18, %v1013_v54  ;;  %v1195_v10 = vpop.f32.mrb[34].mxu0  ;;  %v1420_v53 = vld [vmem:[%s2744_s12 + $0x60] sm:$0xf] }
 0x5ac   :  { %v1206_v3 = vmax.f32 %v1192_v28, 0.0  ;;  %v1196_v23 = vpop.f32.mrb[35].mxu0  ;;  %1846 = vmatpush3.msk.msra.mxu0 %vm172_vm0, %v1420_v53  ;;  %v1402_v54 = vld [vmem:[%s2743_s11 + $0x20] sm:$0xff]  ;;  %vm1609_vm0 = vcmask 33792  }
 0x5ad   :  { %v1207_v25 = vmax.f32 %v1194_v43, 0.0  ;;  %1743 = vmatprep.mubr.msk.bf16.mxu1 %vm1328_vm7, %v1217_v1  ;;  %1906 = vmatprep.subr.bf16.mxu0 %v2068_v4 }
 0x5ae   :  { %1383 = vmatmul.mubr.bf16.gmra.mrb[40].mxu1 %v1216_v24  ;;  %v1212_v29 = vpack.c.bf16 %v1206_v3, %v1206_v3 }
 0x5af   :  { %v1213_v42 = vpack.c.bf16 %v1207_v25, %v1207_v25 }
 0x5b0   :  { %v1218_v32 = vadd.bf16 %v1212_v29, %v2601_v6  ;;  %v1399_v6 = vld [vmem:[%s2743_s11 + $0x8] sm:$0xff] }
 0x5b1   :  { %v1219_v31 = vadd.bf16 %v1213_v42, %v2596_v22 }
 0x5b3   :  { %1744 = vmatprep.mubr.msk.bf16.mxu1 %vm1328_vm7, %v1219_v31 }
 0x5b6   :  { %1391 = vmatmul.mubr.bf16.gmra.mrb[44].mxu1 %v1218_v32 }
 0x679   :  { %v1376_v34 = vpop.f32.mrb[36].mxu1 }
 0x67a   :  { %v1403_v22 = vmul.f32 %v1398_v62, %v1376_v34  ;;  %v1378_v35 = vpop.f32.mrb[37].mxu1 }
 0x67b   :  { %v1379_v36 = vpop.f32.mrb[38].mxu1 }
 0x67c   :  { %v1381_v37 = vpop.f32.mrb[39].mxu1  ;;  %1848 = vmatmul.mubr.msk.f32.vlgmr.msra.gmra.mrb[10].mxu0 %vm1421_vm8, %v1403_v22  ;;  %v1404_v38 = vmul.f32 %v1399_v6, %v1379_v36 }
 0x67d   :  { %1850 = vmatprep.mubr.msk.f32.mxu0 %vm2069_vm1, %v2070_v7 }
 0x680   :  { %1851 = vmatmul.mubr.msk.f32.gmra.mrb[36].mxu0 %vm1421_vm8, %v1404_v38 }
 0x681   :  { %v1384_v40 = vpop.f32.mrb[40].mxu1  ;;  %1853 = vmatprep.mubr.msk.f32.mxu0 %vm2069_vm1, %v2070_v7 }
 0x682   :  { %v1405_v27 = vmul.f32 %v1400_v39, %v1384_v40  ;;  %v1386_v44 = vpop.f32.mrb[41].mxu1 }
 0x683   :  { %v1387_v45 = vpop.f32.mrb[42].mxu1 }
 0x684   :  { %v1389_v49 = vpop.f32.mrb[43].mxu1  ;;  %1854 = vmatmul.mubr.msk.f32.gmra.mrb[38].mxu0 %vm1421_vm8, %v1405_v27  ;;  %v1406_v52 = vmul.f32 %v1401_v47, %v1387_v45 }
 0x685   :  { %1856 = vmatprep.mubr.msk.f32.mxu0 %vm2069_vm1, %v2070_v7 }
 0x688   :  { %1857 = vmatmul.mubr.msk.f32.gmra.mrb[40].mxu0 %vm1421_vm8, %v1406_v52 }
 0x689   :  { %v1392_v56 = vpop.f32.mrb[44].mxu1  ;;  %1859 = vmatprep.mubr.msk.f32.mxu0 %vm2069_vm1, %v2070_v7 }
 0x68a   :  { %v1407_v58 = vmul.f32 %v1402_v54, %v1392_v56  ;;  %v1394_v59 = vpop.f32.mrb[45].mxu1 }
 0x68b   :  { %v1395_v15 = vpop.f32.mrb[46].mxu1 }
 0x68c   :  { %v1396_v46 = vpop.f32.mrb[47].mxu1  ;;  %1860 = vmatmul.mubr.msk.f32.gmra.mrb[42].mxu0 %vm1421_vm8, %v1407_v58 }
 0x68d   :  { %1872 = vmatprep.mubr.msk.f32.mxu0 %vm2069_vm1, %v2070_v7 }
 0x74f   :  { %v1506_v63 = vpop.f32.mrb[10].mxu0 }
 0x750   :  { %v1849_v0 = vpop.f32.mrb[11].mxu0 }
 0x753   :  { %v1511_v30 = vpop.f32.mrb[36].mxu0 }
 0x754   :  { %v1907_v50 = vpack.c.bf16 %v1511_v30, %v1506_v63  ;;  %v1852_v2 = vpop.f32.mrb[37].mxu0 }
 0x756   :  { %1908 = vmatpush3.bf16.msra.mxu0 %v1907_v50 }
 0x757   :  { %v1516_v5 = vpop.f32.mrb[38].mxu0  ;;  %1909 = vmatprep.subr.bf16.mxu0 %v2068_v4  ;;  %v1751_v4 = vld [vmem:[%s2735_s3 + $0x2] ss:$0 sm:$0xff]  ;;  %s2041_s3 = scalar_lea.vmem %s1629_s16, 32 }
 0x758   :  { %v1855_v26 = vpop.f32.mrb[39].mxu0  ;;  %p2042_p7 = scmp.ne.s32.totalorder %s1629_s16, %s2041_s3  ;;  %p2047_p9 = scmp.lt.s32.totalorder %s2041_s3, %s2041_s3 }
 0x75a   :  { %p2048_p10 = por %p2047_p9, %p2046_p8 }
 0x75b   :  { %v1521_v33 = vpop.f32.mrb[40].mxu0 }
 0x75c   :  { %v1910_v8 = vpack.c.bf16 %v1521_v33, %v1516_v5  ;;  %v1858_v9 = vpop.f32.mrb[41].mxu0  ;;  %p2049_p11 = pnand %p2048_p10, %p2042_p7 }
 0x75e   :  { %1911 = vmatpush3.bf16.msra.mxu0 %v1910_v8 }
 0x75f   :  { %v1526_v13 = vpop.f32.mrb[42].mxu0  ;;  %1870 = vmatprep.subr.mxu0 %v2070_v7 }
 0x760   :  { %v1861_v14 = vpop.f32.mrb[43].mxu0 }
 0x762   :  { %1871 = vmatpush3.msra.mxu0 %v1526_v13 }
 0x763   :  { %1873 = vmatmul.mubr.msk.f32.vlgmr.msra.gmra.mrb[44].mxu0 %vm1121_vm5, %v1531_v11 }
 0x836   :  { %v1605_v12 = vpop.f32.mrb[44].mxu0 }
 0x837   :  { %v1606_v16 = vadd.f32 %v1751_v4, %v1605_v12  ;;  %v1874_v57 = vpop.f32.mrb[45].mxu0 }
 0x839   :  { %v1610_v17 = vsel %vm1609_vm0, %v1606_v16, -inf }
 0x83a   :  { %1611 = vmax.xlane.f32.xlu0 %v1610_v17 }
 0x8c7   :  { %v1612_v7 = vpop.xlane.xlu0 %1611 }
 0x8c8   :  { %v1613_v51 = vsub.f32 %v1606_v16, %v1612_v7 }
 0x8ca   :  { %v1614_v48 = vmul.f32 1.442695, %v1613_v51 }
 0x8cc   :  { %2025 = vpow2.f32 %v1614_v48 }
 0x8d6   :  { %v2026_v55 = vpop.eup %2025 }
 0x8d7   :  { %v1616_v60 = vsel %vm1609_vm0, %v2026_v55, 0.0 }
 0x8d8   :  { %1617 = vadd.xlane.f32.xlu0 %v1616_v60 }
 0x965   :  { %v1618_v41 = vpop.xlane.xlu0 %1617 }
 0x966   :  { %2027 = vrcp.f32 %v1618_v41 }
 0x970   :  { %v2028_v61 = vpop.eup %2027 }
 0x971   :  { %v1620_v19 = vmul.f32 %v2028_v61, %v2026_v55 }
 0x973   :  { %1621 = vst.msk [vmem:[#allocation5] sm:$0x3] %vm1609_vm0, %v1620_v19 }
 0x974   :  { %2052 = shalt.err (!%p2049_p11)
}
 0x975   :  { %s2053_s18 = scalar_lea.hbm %s2746_s14, 32 }
 0x976   :  { %p2054_p12 = scmp.ne.s32.totalorder %s2746_s14, %s2053_s18  ;;  %p2057_p13 = scmp.lt.u32.totalorder %s2053_s18, %s2746_s14 }
 0x978   :  { %p2059_p0 = pnand %p2057_p13, %p2054_p12 }
 0x97a   :  { %2062 = shalt.err (!%p2059_p0)
}
 0x97b   :  { %1631 = dma.vmem_to_hbm [thread:$0]  %s1629_s16, 32, %s2746_s14, [#allocation3]  }
 0x97c   :  { %2065 = dma.done.wait [#allocation3], 32  }
 0x97d   :  { %2066 = vsyncadd [#allocation3], 4294967264 }
 0x97e   :  { %1635 = vsyncpa [#allocation3], 1 }
 0x97f   :  { %1636 = vsyncpa [#allocation4], 1 }

</bundles_post_ra>
